<compile_context>
chip_gen: v6e
topology: v6e:2x2x1
jax: 0.10.0
libtpu: 0.0.40
codegen_flags: <defaults>
</compile_context>

<pallas_src>
import math
import functools

import jax
import jax.numpy as jnp
from jax import lax
from jax.experimental import pallas as pl
from jax.experimental.pallas import tpu as pltpu


def _round_up(a, b):
    return (a + b - 1) // b * b


def _arc_margin_kernel(has_ref, x_ref, w_ref, rinv_w_ref, label_ref, out_ref, *,
                       cos_m, sin_m, th, mm, s, easy_margin, tile_n):
    j = pl.program_id(0)          # class-tile index (outer: W tile stays resident)
    i = pl.program_id(1)          # batch-tile index (inner: only small tiles restream)

    # cosine = normalize(x) @ normalize(W)^T.  x arrives pre-normalized; W row
    # inverse-norms arrive as a (1, tile_n) f32 input.  Contract E of both
    # operands directly (no materialized transpose of the weight tile).
    raw = lax.dot_general(x_ref[...], w_ref[...],
                          dimension_numbers=(((1,), (1,)), ((), ())),
                          preferred_element_type=jnp.float32)      # (tile_b, tile_n) f32
    cosine = raw * rinv_w_ref[...]

    # Scalar (SMEM) flag: does any label of this batch tile land in this class tile?
    has_label = has_ref[i, j]

    @pl.when(has_label == 0)
    def _():
        # Fast path (vast majority of tiles at real class counts): no margin
        # column in this tile, so the output is just scaled cosine.
        out_ref[...] = (cosine * s).astype(out_ref.dtype)

    @pl.when(has_label != 0)
    def _():
        # Margin path.  Clamp before sqrt: cosine can exceed 1.0 by ULPs.
        sine = jnp.sqrt(jnp.maximum(1.0 - cosine * cosine, 0.0))
        phi = cosine * cos_m - sine * sin_m
        if easy_margin:
            phi = jnp.where(cosine > 0.0, phi, cosine)
        else:
            phi = jnp.where(cosine > th, phi, cosine - mm)
        # Scatter-free one-hot: single select + scale on the output tile.
        col = j * tile_n + lax.broadcasted_iota(jnp.int32, cosine.shape, 1)
        out_ref[...] = (jnp.where(col == label_ref[...], phi, cosine) * s
                        ).astype(out_ref.dtype)


@functools.partial(jax.jit, static_argnames=(
    "margin_m", "margin_s", "easy_margin", "tile_n", "tile_b",
    "compute_dtype", "out_dtype"))
def arc_margin_forward(x, weight, label, *, margin_m=0.5, margin_s=64.0,
                       easy_margin=False, tile_n=2048, tile_b=256,
                       compute_dtype=jnp.bfloat16, out_dtype=jnp.float32):
    B, E = x.shape
    C, E2 = weight.shape
    assert E == E2, "embedding dims must match"

    cos_m = math.cos(margin_m)
    sin_m = math.sin(margin_m)
    th = math.cos(math.pi - margin_m)
    mm = math.sin(math.pi - margin_m) * margin_m

    # Tile sizing: lane-dense 2048-wide class tiles, up to 256 batch rows (fills
    # the 256x256 MXU on v6e/v7x).  Double-buffered working set at E=512 is
    # ~17 MiB -- inside the explicit 48 MiB VMEM limit on every generation
    # (v5e/v6e 128 MiB physical, v7x 64 MiB physical).
    tile_b = min(tile_b, _round_up(B, 8))
    tile_n = min(tile_n, _round_up(C, 128))
    Bp = _round_up(B, tile_b)
    Cp = _round_up(C, tile_n)
    nb, nc = Bp // tile_b, Cp // tile_n

    # ---- hoisted preprocessing (XLA fuses each into one pass per operand) ----
    # x: F.normalize in f32 (eps = 1e-12 semantics), then cast / pad.
    x32 = x.astype(jnp.float32)
    rinv_x = lax.rsqrt(jnp.maximum(jnp.sum(x32 * x32, axis=-1, keepdims=True), 1e-24))
    xp = jnp.pad((x32 * rinv_x).astype(compute_dtype), ((0, Bp - B), (0, 0)))

    # W: row inverse-norms from the f32 weights (hoisted out of the kernel).
    # Padded columns get rinv_w == 0, so they are exactly zero in the output.
    # NOTE: when W is reused across many steps (training), cache wp / rinv_wp
    # outside this jit instead of re-padding/casting every call.
    w32 = weight.astype(jnp.float32)
    rinv_w = lax.rsqrt(jnp.maximum(jnp.sum(w32 * w32, axis=-1, keepdims=True), 1e-24))
    rinv_wp = jnp.pad(rinv_w.reshape(1, C), ((0, 0), (0, Cp - C)))
    wp = jnp.pad(weight.astype(compute_dtype), ((0, Cp - C), (0, 0)))
    # TODO(synk): optional int8 (v5e/v6e) / fp8 (v7x) W streaming with the scale
    # folded into rinv_wp would halve the dominant HBM stream.

    labelp = jnp.pad(label.reshape(B, 1).astype(jnp.int32),
                     ((0, Bp - B), (0, 0)), constant_values=-1)

    # Per (batch-tile, class-tile) flag: does any label land in that class tile?
    # Scalar-prefetched into SMEM; gates the margin epilogue in the kernel.
    lbl_tiles = labelp.reshape(nb, tile_b) // tile_n          # padding rows -> -1
    has = (lbl_tiles[:, :, None]
           == jnp.arange(nc, dtype=jnp.int32)[None, None, :]).any(axis=1)
    has = has.astype(jnp.int32)                                # (nb, nc)

    kernel = functools.partial(
        _arc_margin_kernel,
        cos_m=cos_m, sin_m=sin_m, th=th, mm=mm, s=margin_s,
        easy_margin=easy_margin, tile_n=tile_n)

    out = pl.pallas_call(
        kernel,
        out_shape=jax.ShapeDtypeStruct((Bp, Cp), out_dtype),
        grid_spec=pltpu.PrefetchScalarGridSpec(
            num_scalar_prefetch=1,
            # Class tiles OUTER so the big W tile is the resident operand and is
            # streamed from HBM exactly once; x/label (tiny) restream instead.
            grid=(nc, nb),
            in_specs=[
                pl.BlockSpec((tile_b, E), lambda j, i, has: (i, 0)),   # normalized x
                pl.BlockSpec((tile_n, E), lambda j, i, has: (j, 0)),   # W class tile
                pl.BlockSpec((1, tile_n), lambda j, i, has: (0, j)),   # rinv_w (f32)
                pl.BlockSpec((tile_b, 1), lambda j, i, has: (i, 0)),   # labels
            ],
            out_specs=pl.BlockSpec((tile_b, tile_n), lambda j, i, has: (i, j)),
        ),
        compiler_params=pltpu.CompilerParams(
            dimension_semantics=("parallel", "parallel"),
            # Above v5e's 16 MiB scoped default, below v7x's 64 MiB physical.
            vmem_limit_bytes=48 * 1024 * 1024),
    )(has, xp, wp, rinv_wp, labelp)

    return out[:B, :C]


def _reference(x, weight, label, *, margin_m=0.5, margin_s=64.0, easy_margin=False):
    # Pure-JAX port of the torch forward (same sqrt clamp as the kernel; torch
    # would NaN whenever cosine exceeds 1.0 by rounding).
    cos_m = math.cos(margin_m); sin_m = math.sin(margin_m)
    th = math.cos(math.pi - margin_m); mm = math.sin(math.pi - margin_m) * margin_m
    x_n = x / jnp.maximum(jnp.linalg.norm(x, axis=-1, keepdims=True), 1e-12)
    w_n = weight / jnp.maximum(jnp.linalg.norm(weight, axis=-1, keepdims=True), 1e-12)
    cosine = x_n @ w_n.T
    sine = jnp.sqrt(jnp.maximum(1.0 - cosine ** 2, 0.0))
    phi = cosine * cos_m - sine * sin_m
    if easy_margin:
        phi = jnp.where(cosine > 0, phi, cosine)
    else:
        phi = jnp.where(cosine > th, phi, cosine - mm)
    one_hot = jax.nn.one_hot(label, weight.shape[0], dtype=jnp.float32)
    return margin_s * (one_hot * phi + (1.0 - one_hot) * cosine)


if __name__ == "__main__":
    B, E, C = 8, 128, 2048      # batch, emb_size, num_classes (small demo shapes)
    key = jax.random.PRNGKey(0)
    kx, kw, kl = jax.random.split(key, 3)

    x = jax.random.normal(kx, (B, E), dtype=jnp.float32)

    # xavier_uniform_ on (num_classes, emb_size): bound = sqrt(6 / (fan_in + fan_out))
    bound = math.sqrt(6.0 / (C + E))
    weight = jax.random.uniform(kw, (C, E), dtype=jnp.float32,
                                minval=-bound, maxval=bound)
    label = jax.random.randint(kl, (B,), 0, C, dtype=jnp.int32)

    ref = _reference(x, weight, label, margin_m=0.5, margin_s=64.0, easy_margin=False)

    # 1) f32 path: tight check against the module semantics.
    out_f32 = jax.block_until_ready(
        arc_margin_forward(x, weight, label, compute_dtype=jnp.float32))
    assert out_f32.shape == (B, C)
    assert jnp.allclose(out_f32, ref, atol=2e-3, rtol=1e-3), "f32 kernel mismatch vs reference"

    # 2) default bf16 weight-streaming path (the HBM-bound production config);
    #    tolerance sized for bf16 operand rounding amplified by s = 64.
    out_bf16 = jax.block_until_ready(arc_margin_forward(x, weight, label))
    assert out_bf16.shape == (B, C)
    assert jnp.allclose(out_bf16, ref, atol=0.5, rtol=0.05), "bf16 kernel mismatch vs reference"

    print("KERNEL_OK")
</pallas_src>

<mosaic_0001>
module attributes {stable_mosaic.version = 11 : i64} {
  func.func @_arc_margin_kernel(%arg0: i32, %arg1: i32, %arg2: memref<1x1xi32, #tpu.memory_space<smem>>, %arg3: memref<8x128xf32, #tpu.memory_space<vmem>>, %arg4: memref<2048x128xf32, #tpu.memory_space<vmem>>, %arg5: memref<1x2048xf32, #tpu.memory_space<vmem>>, %arg6: memref<8x1xi32, #tpu.memory_space<vmem>>, %arg7: memref<8x2048xf32, #tpu.memory_space<vmem>>) attributes {dimension_semantics = [#tpu.dimension_semantics<parallel>, #tpu.dimension_semantics<parallel>], iteration_bounds = array<i64: 1, 1>, scalar_prefetch = 1 : i64, scratch_operands = 0 : i64, tpu.core_type = #tpu.core_type<tc>, window_params = [{transform_indices = @transform_0, window_bounds = array<i64: 8, 128>}, {transform_indices = @transform_1, window_bounds = array<i64: 2048, 128>}, {transform_indices = @transform_2, window_bounds = array<i64: 1, 2048>}, {transform_indices = @transform_3, window_bounds = array<i64: 8, 1>}, {transform_indices = @transform_4, window_bounds = array<i64: 8, 2048>}]} {
    %c0 = arith.constant 0 : index
    %c0_0 = arith.constant 0 : index
    %0 = vector.load %arg3[%c0, %c0_0] : memref<8x128xf32, #tpu.memory_space<vmem>>, vector<8x128xf32>
    %c0_1 = arith.constant 0 : index
    %c0_2 = arith.constant 0 : index
    %1 = vector.load %arg4[%c0_1, %c0_2] : memref<2048x128xf32, #tpu.memory_space<vmem>>, vector<2048x128xf32>
    %cst = arith.constant dense<0.000000e+00> : vector<8x2048xf32>
    %2 = tpu.matmul %0, %1, %cst {dimension_numbers = #tpu.dot_dimension_numbers<[1], [1], [0], [0], [0, 0, 1, 0], [], []>} : vector<8x128xf32>, vector<2048x128xf32>, vector<8x2048xf32> -> vector<8x2048xf32>
    %c0_3 = arith.constant 0 : index
    %c0_4 = arith.constant 0 : index
    %3 = vector.load %arg5[%c0_3, %c0_4] : memref<1x2048xf32, #tpu.memory_space<vmem>>, vector<1x2048xf32>
    %4 = vector.broadcast %3 : vector<1x2048xf32> to vector<8x2048xf32>
    %5 = arith.mulf %2, %4 : vector<8x2048xf32>
    %6 = arith.index_cast %arg1 : i32 to index
    %7 = arith.index_cast %arg0 : i32 to index
    %8 = memref.load %arg2[%6, %7] : memref<1x1xi32, #tpu.memory_space<smem>>
    %c0_i32 = arith.constant 0 : i32
    %9 = arith.cmpi eq, %8, %c0_i32 : i32
    %10 = arith.extui %9 : i1 to i32
    %c0_i32_5 = arith.constant 0 : i32
    %11 = arith.cmpi ne, %10, %c0_i32_5 : i32
    scf.if %11 {
      %cst_8 = arith.constant 6.400000e+01 : f32
      %15 = vector.broadcast %cst_8 : f32 to vector<8x2048xf32>
      %16 = arith.mulf %5, %15 : vector<8x2048xf32>
      %c0_9 = arith.constant 0 : index
      %c0_10 = arith.constant 0 : index
      %17 = vector.load %arg7[%c0_9, %c0_10] : memref<8x2048xf32, #tpu.memory_space<vmem>>, vector<8x2048xf32>
      tpu.vector_store %arg7[%c0_9, %c0_10], %16 {strides = array<i32>} : memref<8x2048xf32, #tpu.memory_space<vmem>>, vector<8x2048xf32>,
    } else {
    }
    %c0_i32_6 = arith.constant 0 : i32
    %12 = arith.cmpi ne, %8, %c0_i32_6 : i32
    %13 = arith.extui %12 : i1 to i32
    %c0_i32_7 = arith.constant 0 : i32
    %14 = arith.cmpi ne, %13, %c0_i32_7 : i32
    scf.if %14 {
      %15 = arith.mulf %5, %5 : vector<8x2048xf32>
      %cst_8 = arith.constant 1.000000e+00 : f32
      %16 = vector.broadcast %cst_8 : f32 to vector<8x2048xf32>
      %17 = arith.subf %16, %15 : vector<8x2048xf32>
      %cst_9 = arith.constant 0.000000e+00 : f32
      %18 = vector.broadcast %cst_9 : f32 to vector<8x2048xf32>
      %19 = arith.maximumf %17, %18 : vector<8x2048xf32>
      %20 = math.sqrt %19 : vector<8x2048xf32>
      %cst_10 = arith.constant 0.87758255 : f32
      %21 = vector.broadcast %cst_10 : f32 to vector<8x2048xf32>
      %22 = arith.mulf %5, %21 : vector<8x2048xf32>
      %cst_11 = arith.constant 0.47942555 : f32
      %23 = vector.broadcast %cst_11 : f32 to vector<8x2048xf32>
      %24 = arith.mulf %20, %23 : vector<8x2048xf32>
      %25 = arith.subf %22, %24 : vector<8x2048xf32>
      %cst_12 = arith.constant -0.87758255 : f32
      %26 = vector.broadcast %cst_12 : f32 to vector<8x2048xf32>
      %27 = arith.cmpf ogt, %5, %26 : vector<8x2048xf32>
      %cst_13 = arith.constant 0.239712775 : f32
      %28 = vector.broadcast %cst_13 : f32 to vector<8x2048xf32>
      %29 = arith.subf %5, %28 : vector<8x2048xf32>
      %30 = arith.select %27, %25, %29 : vector<8x2048xi1>, vector<8x2048xf32>
      %c2048_i32 = arith.constant 2048 : i32
      %31 = arith.muli %arg0, %c2048_i32 : i32
      %32 = tpu.iota {dimensions = array<i32: 1>} : vector<8x2048xi32>
      %33 = vector.broadcast %31 : i32 to vector<8x2048xi32>
      %34 = arith.addi %33, %32 : vector<8x2048xi32>
      %c0_14 = arith.constant 0 : index
      %c0_15 = arith.constant 0 : index
      %35 = vector.load %arg6[%c0_14, %c0_15] : memref<8x1xi32, #tpu.memory_space<vmem>>, vector<8x1xi32>
      %36 = vector.broadcast %35 : vector<8x1xi32> to vector<8x2048xi32>
      %37 = arith.cmpi eq, %34, %36 : vector<8x2048xi32>
      %38 = arith.select %37, %30, %5 : vector<8x2048xi1>, vector<8x2048xf32>
      %cst_16 = arith.constant 6.400000e+01 : f32
      %39 = vector.broadcast %cst_16 : f32 to vector<8x2048xf32>
      %40 = arith.mulf %38, %39 : vector<8x2048xf32>
      %c0_17 = arith.constant 0 : index
      %c0_18 = arith.constant 0 : index
      %41 = vector.load %arg7[%c0_17, %c0_18] : memref<8x2048xf32, #tpu.memory_space<vmem>>, vector<8x2048xf32>
      tpu.vector_store %arg7[%c0_17, %c0_18], %40 {strides = array<i32>} : memref<8x2048xf32, #tpu.memory_space<vmem>>, vector<8x2048xf32>,
    } else {
    }
    return
  }
  func.func @transform_0(%arg0: i32, %arg1: i32, %arg2: memref<1x1xi32, #tpu.memory_space<smem>>) -> (i32, i32) {
    %c0_i32 = arith.constant 0 : i32
    %c0_i32_0 = arith.constant 0 : i32
    return %arg1, %c0_i32 : i32, i32
  }
  func.func @transform_1(%arg0: i32, %arg1: i32, %arg2: memref<1x1xi32, #tpu.memory_space<smem>>) -> (i32, i32) {
    %c0_i32 = arith.constant 0 : i32
    %c0_i32_0 = arith.constant 0 : i32
    return %arg0, %c0_i32 : i32, i32
  }
  func.func @transform_2(%arg0: i32, %arg1: i32, %arg2: memref<1x1xi32, #tpu.memory_space<smem>>) -> (i32, i32) {
    %c0_i32 = arith.constant 0 : i32
    %c0_i32_0 = arith.constant 0 : i32
    return %c0_i32, %arg0 : i32, i32
  }
  func.func @transform_3(%arg0: i32, %arg1: i32, %arg2: memref<1x1xi32, #tpu.memory_space<smem>>) -> (i32, i32) {
    %c0_i32 = arith.constant 0 : i32
    %c0_i32_0 = arith.constant 0 : i32
    return %arg1, %c0_i32 : i32, i32
  }
  func.func @transform_4(%arg0: i32, %arg1: i32, %arg2: memref<1x1xi32, #tpu.memory_space<smem>>) -> (i32, i32) {
    %c0_i32 = arith.constant 0 : i32
    return %arg1, %arg0 : i32, i32
  }
}

</mosaic_0001>

<bundles_post_ra>
// kernel: arc_margin_forward.1
= control target key start
LH: loop header
LB: loop body
LE: loop exit
PB: predicated region body
PF: predicated region fallthrough
CT: control target
= control target key end

     0   :  { %11 = vsyncpa [#allocation5], 0  ;;  %s3073_s0 = inlined_call_operand.<no memory space> [shape: s32[1,1], index: 0, kind: input, shape index: {}]   ;;  %s3074_s1 = inlined_call_operand.vmem [shape: f32[8,128], index: 1, kind: input, shape index: {}]   ;;  %s3075_s2 = inlined_call_operand.vmem [shape: f32[2048,128], index: 2, kind: input, shape index: {}]   ;;  %s3076_s3 = inlined_call_operand.vmem [shape: f32[1,2048], index: 3, kind: input, shape index: {}]   ;;  %s3077_s4 = inlined_call_operand.vmem [shape: s32[8,1], index: 4, kind: input, shape index: {}]   ;;  %s3078_s5 = inlined_call_operand.hbm [shape: f32[8,2048], index: 5, kind: output, shape index: {}]  }
   0x1   :  { %v52_v0 = vld [vmem:[%s3075_s2 + $0xf8] sm:$0xff]  ;;  %v51_v4 = vld [vmem:[%s3075_s2 + $0xf0] sm:$0xff]  ;;  %v50_v8 = vld [vmem:[%s3075_s2 + $0xe8] sm:$0xff]  ;;  %p1362_p0 = scmp.ne.s32.totalorder %s3073_s0, 0 }
   0x2   :  { %v84_v1 = vld [vmem:[%s3075_s2 + $0x1f8] sm:$0xff]  ;;  %1380 = vmatprep.subr.mxu0 %v52_v0  ;;  %v83_v5 = vld [vmem:[%s3075_s2 + $0x1f0] sm:$0xff]  ;;  %v82_v9 = vld [vmem:[%s3075_s2 + $0x1e8] sm:$0xff] }
   0x3   :  { %1414 = vmatprep.subr.mxu1 %v84_v1  ;;  %v36_v2 = vld [vmem:[%s3075_s2 + $0x78] sm:$0xff]  ;;  %v35_v6 = vld [vmem:[%s3075_s2 + $0x70] sm:$0xff]  ;;  %v34_v10 = vld [vmem:[%s3075_s2 + $0x68] sm:$0xff] }
   0x4   :  { %v68_v3 = vld [vmem:[%s3075_s2 + $0x178] sm:$0xff]  ;;  %1381 = vmatpush3.xpose.msra.mxu0 %v36_v2  ;;  %v67_v7 = vld [vmem:[%s3075_s2 + $0x170] sm:$0xff]  ;;  %v66_v11 = vld [vmem:[%s3075_s2 + $0x168] sm:$0xff] }
   0x5   :  { %1415 = vmatpush3.xpose.msra.mxu1 %v68_v3  ;;  %1382 = vmatprep.subr.mxu0 %v51_v4  ;;  %v49_v12 = vld [vmem:[%s3075_s2 + $0xe0] sm:$0xff]  ;;  %v48_v16 = vld [vmem:[%s3075_s2 + $0xd8] sm:$0xff]  ;;  %v47_v20 = vld [vmem:[%s3075_s2 + $0xd0] sm:$0xff] }
   0x6   :  { %1416 = vmatprep.subr.mxu1 %v83_v5  ;;  %v81_v13 = vld [vmem:[%s3075_s2 + $0x1e0] sm:$0xff]  ;;  %v80_v17 = vld [vmem:[%s3075_s2 + $0x1d8] sm:$0xff]  ;;  %v79_v21 = vld [vmem:[%s3075_s2 + $0x1d0] sm:$0xff] }
   0x7   :  { %v33_v14 = vld [vmem:[%s3075_s2 + $0x60] sm:$0xff]  ;;  %v32_v18 = vld [vmem:[%s3075_s2 + $0x58] sm:$0xff]  ;;  %v31_v22 = vld [vmem:[%s3075_s2 + $0x50] sm:$0xff] }
   0x8   :  { %1383 = vmatpush3.xpose.msra.mxu0 %v35_v6  ;;  %v65_v15 = vld [vmem:[%s3075_s2 + $0x160] sm:$0xff]  ;;  %v64_v19 = vld [vmem:[%s3075_s2 + $0x158] sm:$0xff]  ;;  %v63_v23 = vld [vmem:[%s3075_s2 + $0x150] sm:$0xff] }
   0x9   :  { %1417 = vmatpush3.xpose.msra.mxu1 %v67_v7  ;;  %1384 = vmatprep.subr.mxu0 %v50_v8  ;;  %v46_v24 = vld [vmem:[%s3075_s2 + $0xc8] sm:$0xff]  ;;  %v1822_v26 = vld [vmem:[%s3074_s1] sm:$0xff]  ;;  %v44_v33 = vld [vmem:[%s3075_s2 + $0xb8] sm:$0xff] }
   0xa   :  { %1418 = vmatprep.subr.mxu1 %v82_v9  ;;  %v78_v25 = vld [vmem:[%s3075_s2 + $0x1c8] sm:$0xff]  ;;  %v45_v29 = vld [vmem:[%s3075_s2 + $0xc0] sm:$0xff]  ;;  %1412 = vmatprep.mubr.f32.mxu0 %v1822_v26  ;;  %v76_v34 = vld [vmem:[%s3075_s2 + $0x1b8] sm:$0xff] }
   0xb   :  { %v30_v27 = vld [vmem:[%s3075_s2 + $0x48] sm:$0xff]  ;;  %v77_v30 = vld [vmem:[%s3075_s2 + $0x1c0] sm:$0xff]  ;;  %1446 = vmatprep.mubr.f32.mxu1 %v1822_v26  ;;  %v28_v35 = vld [vmem:[%s3075_s2 + $0x38] sm:$0xff] }
   0xc   :  { %1385 = vmatpush3.xpose.msra.mxu0 %v34_v10  ;;  %v62_v28 = vld [vmem:[%s3075_s2 + $0x148] sm:$0xff]  ;;  %v29_v31 = vld [vmem:[%s3075_s2 + $0x40] sm:$0xff]  ;;  %v60_v36 = vld [vmem:[%s3075_s2 + $0x138] sm:$0xff] }
   0xd   :  { %1419 = vmatpush3.xpose.msra.mxu1 %v66_v11  ;;  %1386 = vmatprep.subr.mxu0 %v49_v12  ;;  %v61_v32 = vld [vmem:[%s3075_s2 + $0x140] sm:$0xff]  ;;  %v43_v37 = vld [vmem:[%s3075_s2 + $0xb0] sm:$0xff]  ;;  %v42_v41 = vld [vmem:[%s3075_s2 + $0xa8] sm:$0xff] }
   0xe   :  { %1420 = vmatprep.subr.mxu1 %v81_v13  ;;  %v75_v38 = vld [vmem:[%s3075_s2 + $0x1b0] sm:$0xff]  ;;  %v74_v42 = vld [vmem:[%s3075_s2 + $0x1a8] sm:$0xff]  ;;  %v41_v45 = vld [vmem:[%s3075_s2 + $0xa0] sm:$0xff] }
   0xf   :  { %v27_v39 = vld [vmem:[%s3075_s2 + $0x30] sm:$0xff]  ;;  %v26_v43 = vld [vmem:[%s3075_s2 + $0x28] sm:$0xff]  ;;  %v73_v46 = vld [vmem:[%s3075_s2 + $0x1a0] sm:$0xff] }
  0x10   :  { %1387 = vmatpush3.xpose.msra.mxu0 %v33_v14  ;;  %v59_v40 = vld [vmem:[%s3075_s2 + $0x130] sm:$0xff]  ;;  %v58_v44 = vld [vmem:[%s3075_s2 + $0x128] sm:$0xff]  ;;  %v25_v47 = vld [vmem:[%s3075_s2 + $0x20] sm:$0xff] }
  0x11   :  { %1421 = vmatpush3.xpose.msra.mxu1 %v65_v15  ;;  %1388 = vmatprep.subr.mxu0 %v48_v16  ;;  %v57_v48 = vld [vmem:[%s3075_s2 + $0x120] sm:$0xff]  ;;  %v40_v49 = vld [vmem:[%s3075_s2 + $0x98] sm:$0xff]  ;;  %v39_v53 = vld [vmem:[%s3075_s2 + $0x90] sm:$0xff] }
  0x12   :  { %1422 = vmatprep.subr.mxu1 %v80_v17  ;;  %v72_v50 = vld [vmem:[%s3075_s2 + $0x198] sm:$0xff]  ;;  %v71_v54 = vld [vmem:[%s3075_s2 + $0x190] sm:$0xff]  ;;  %v38_v57 = vld [vmem:[%s3075_s2 + $0x88] sm:$0xff] }
  0x13   :  { %v24_v51 = vld [vmem:[%s3075_s2 + $0x18] sm:$0xff]  ;;  %v23_v55 = vld [vmem:[%s3075_s2 + $0x10] sm:$0xff]  ;;  %v70_v58 = vld [vmem:[%s3075_s2 + $0x188] sm:$0xff] }
  0x14   :  { %1389 = vmatpush3.xpose.msra.mxu0 %v32_v18  ;;  %v56_v52 = vld [vmem:[%s3075_s2 + $0x118] sm:$0xff]  ;;  %v55_v56 = vld [vmem:[%s3075_s2 + $0x110] sm:$0xff]  ;;  %v22_v59 = vld [vmem:[%s3075_s2 + $0x8] sm:$0xff] }
  0x15   :  { %1423 = vmatpush3.xpose.msra.mxu1 %v64_v19  ;;  %1390 = vmatprep.subr.mxu0 %v47_v20  ;;  %v54_v60 = vld [vmem:[%s3075_s2 + $0x108] sm:$0xff]  ;;  %v37_v61 = vld [vmem:[%s3075_s2 + $0x80] sm:$0xff]  ;;  %v116_v1 = vld [vmem:[%s3075_s2 + $0x2f8] sm:$0xff] }
  0x16   :  { %1424 = vmatprep.subr.mxu1 %v79_v21  ;;  %v69_v62 = vld [vmem:[%s3075_s2 + $0x180] sm:$0xff]  ;;  %v148_v2 = vld [vmem:[%s3075_s2 + $0x3f8] sm:$0xff]  ;;  %v115_v5 = vld [vmem:[%s3075_s2 + $0x2f0] sm:$0xff] }
  0x17   :  { %v21_v63 = vld [vmem:[%s3075_s2] sm:$0xff]  ;;  %v100_v3 = vld [vmem:[%s3075_s2 + $0x278] sm:$0xff]  ;;  %v147_v6 = vld [vmem:[%s3075_s2 + $0x3f0] sm:$0xff] }
  0x18   :  { %1391 = vmatpush3.xpose.msra.mxu0 %v31_v22  ;;  %v53_v0 = vld [vmem:[%s3075_s2 + $0x100] sm:$0xff]  ;;  %v132_v4 = vld [vmem:[%s3075_s2 + $0x378] sm:$0xff]  ;;  %v99_v7 = vld [vmem:[%s3075_s2 + $0x270] sm:$0xff] }
  0x19   :  { %1425 = vmatpush3.xpose.msra.mxu1 %v63_v23  ;;  %1392 = vmatprep.subr.mxu0 %v46_v24  ;;  %v131_v8 = vld [vmem:[%s3075_s2 + $0x370] sm:$0xff]  ;;  %v114_v9 = vld [vmem:[%s3075_s2 + $0x2e8] sm:$0xff]  ;;  %v113_v13 = vld [vmem:[%s3075_s2 + $0x2e0] sm:$0xff] }
  0x1a   :  { %1426 = vmatprep.subr.mxu1 %v78_v25  ;;  %v146_v10 = vld [vmem:[%s3075_s2 + $0x3e8] sm:$0xff]  ;;  %v145_v14 = vld [vmem:[%s3075_s2 + $0x3e0] sm:$0xff]  ;;  %v112_v17 = vld [vmem:[%s3075_s2 + $0x2d8] sm:$0xff] }
  0x1b   :  { %v98_v11 = vld [vmem:[%s3075_s2 + $0x268] sm:$0xff]  ;;  %v97_v15 = vld [vmem:[%s3075_s2 + $0x260] sm:$0xff]  ;;  %v144_v18 = vld [vmem:[%s3075_s2 + $0x3d8] sm:$0xff] }
  0x1c   :  { %1393 = vmatpush3.xpose.msra.mxu0 %v30_v27  ;;  %v130_v12 = vld [vmem:[%s3075_s2 + $0x368] sm:$0xff]  ;;  %v129_v16 = vld [vmem:[%s3075_s2 + $0x360] sm:$0xff]  ;;  %v96_v19 = vld [vmem:[%s3075_s2 + $0x258] sm:$0xff] }
  0x1d   :  { %1427 = vmatpush3.xpose.msra.mxu1 %v62_v28  ;;  %1394 = vmatprep.subr.mxu0 %v45_v29  ;;  %v128_v20 = vld [vmem:[%s3075_s2 + $0x358] sm:$0xff]  ;;  %v111_v21 = vld [vmem:[%s3075_s2 + $0x2d0] sm:$0xff]  ;;  %v110_v25 = vld [vmem:[%s3075_s2 + $0x2c8] sm:$0xff] }
  0x1e   :  { %1428 = vmatprep.subr.mxu1 %v77_v30  ;;  %v143_v22 = vld [vmem:[%s3075_s2 + $0x3d0] sm:$0xff]  ;;  %v142_v27 = vld [vmem:[%s3075_s2 + $0x3c8] sm:$0xff]  ;;  %v109_v30 = vld [vmem:[%s3075_s2 + $0x2c0] sm:$0xff] }
  0x1f   :  { %v95_v23 = vld [vmem:[%s3075_s2 + $0x250] sm:$0xff]  ;;  %v94_v28 = vld [vmem:[%s3075_s2 + $0x248] sm:$0xff] }
  0x20   :  { %1395 = vmatpush3.xpose.msra.mxu0 %v29_v31  ;;  %v127_v24 = vld [vmem:[%s3075_s2 + $0x350] sm:$0xff]  ;;  %v126_v29 = vld [vmem:[%s3075_s2 + $0x348] sm:$0xff]  ;;  %v141_v31 = vld [vmem:[%s3075_s2 + $0x3c0] sm:$0xff] }
  0x21   :  { %1429 = vmatpush3.xpose.msra.mxu1 %v61_v32  ;;  %1396 = vmatprep.subr.mxu0 %v44_v33  ;;  %v93_v32 = vld [vmem:[%s3075_s2 + $0x240] sm:$0xff] }
  0x22   :  { %1430 = vmatprep.subr.mxu1 %v76_v34  ;;  %v125_v33 = vld [vmem:[%s3075_s2 + $0x340] sm:$0xff]  ;;  %v108_v34 = vld [vmem:[%s3075_s2 + $0x2b8] sm:$0xff] }
  0x24   :  { %1397 = vmatpush3.xpose.msra.mxu0 %v28_v35  ;;  %v140_v35 = vld [vmem:[%s3075_s2 + $0x3b8] sm:$0xff] }
  0x25   :  { %1431 = vmatpush3.xpose.msra.mxu1 %v60_v36  ;;  %1398 = vmatprep.subr.mxu0 %v43_v37  ;;  %v92_v36 = vld [vmem:[%s3075_s2 + $0x238] sm:$0xff] }
  0x26   :  { %1432 = vmatprep.subr.mxu1 %v75_v38  ;;  %v124_v37 = vld [vmem:[%s3075_s2 + $0x338] sm:$0xff]  ;;  %v107_v38 = vld [vmem:[%s3075_s2 + $0x2b0] sm:$0xff] }
  0x28   :  { %1399 = vmatpush3.xpose.msra.mxu0 %v27_v39  ;;  %v139_v39 = vld [vmem:[%s3075_s2 + $0x3b0] sm:$0xff] }
  0x29   :  { %1433 = vmatpush3.xpose.msra.mxu1 %v59_v40  ;;  %1400 = vmatprep.subr.mxu0 %v42_v41  ;;  %v91_v40 = vld [vmem:[%s3075_s2 + $0x230] sm:$0xff] }
  0x2a   :  { %1434 = vmatprep.subr.mxu1 %v74_v42  ;;  %v123_v41 = vld [vmem:[%s3075_s2 + $0x330] sm:$0xff]  ;;  %v106_v42 = vld [vmem:[%s3075_s2 + $0x2a8] sm:$0xff] }
  0x2c   :  { %1401 = vmatpush3.xpose.msra.mxu0 %v26_v43  ;;  %v138_v43 = vld [vmem:[%s3075_s2 + $0x3a8] sm:$0xff] }
  0x2d   :  { %1435 = vmatpush3.xpose.msra.mxu1 %v58_v44  ;;  %1402 = vmatprep.subr.mxu0 %v41_v45  ;;  %v90_v44 = vld [vmem:[%s3075_s2 + $0x228] sm:$0xff] }
  0x2e   :  { %1436 = vmatprep.subr.mxu1 %v73_v46  ;;  %v122_v45 = vld [vmem:[%s3075_s2 + $0x328] sm:$0xff]  ;;  %v105_v46 = vld [vmem:[%s3075_s2 + $0x2a0] sm:$0xff] }
  0x30   :  { %1403 = vmatpush3.xpose.msra.mxu0 %v25_v47  ;;  %v137_v47 = vld [vmem:[%s3075_s2 + $0x3a0] sm:$0xff] }
  0x31   :  { %1437 = vmatpush3.xpose.msra.mxu1 %v57_v48  ;;  %1404 = vmatprep.subr.mxu0 %v40_v49  ;;  %v89_v48 = vld [vmem:[%s3075_s2 + $0x220] sm:$0xff] }
  0x32   :  { %1438 = vmatprep.subr.mxu1 %v72_v50  ;;  %v121_v49 = vld [vmem:[%s3075_s2 + $0x320] sm:$0xff]  ;;  %v104_v50 = vld [vmem:[%s3075_s2 + $0x298] sm:$0xff] }
  0x34   :  { %1405 = vmatpush3.xpose.msra.mxu0 %v24_v51  ;;  %v136_v51 = vld [vmem:[%s3075_s2 + $0x398] sm:$0xff] }
  0x35   :  { %1439 = vmatpush3.xpose.msra.mxu1 %v56_v52  ;;  %1406 = vmatprep.subr.mxu0 %v39_v53  ;;  %v88_v52 = vld [vmem:[%s3075_s2 + $0x218] sm:$0xff] }
  0x36   :  { %1440 = vmatprep.subr.mxu1 %v71_v54  ;;  %v120_v53 = vld [vmem:[%s3075_s2 + $0x318] sm:$0xff]  ;;  %v103_v54 = vld [vmem:[%s3075_s2 + $0x290] sm:$0xff] }
  0x38   :  { %1407 = vmatpush3.xpose.msra.mxu0 %v23_v55  ;;  %v135_v55 = vld [vmem:[%s3075_s2 + $0x390] sm:$0xff] }
  0x39   :  { %1441 = vmatpush3.xpose.msra.mxu1 %v55_v56  ;;  %1408 = vmatprep.subr.mxu0 %v38_v57  ;;  %v87_v56 = vld [vmem:[%s3075_s2 + $0x210] sm:$0xff] }
  0x3a   :  { %1442 = vmatprep.subr.mxu1 %v70_v58  ;;  %v119_v57 = vld [vmem:[%s3075_s2 + $0x310] sm:$0xff]  ;;  %v102_v58 = vld [vmem:[%s3075_s2 + $0x288] sm:$0xff] }
  0x3c   :  { %1409 = vmatpush3.xpose.msra.mxu0 %v22_v59  ;;  %v134_v59 = vld [vmem:[%s3075_s2 + $0x388] sm:$0xff] }
  0x3d   :  { %1443 = vmatpush3.xpose.msra.mxu1 %v54_v60  ;;  %1410 = vmatprep.subr.mxu0 %v37_v61  ;;  %v86_v60 = vld [vmem:[%s3075_s2 + $0x208] sm:$0xff] }
  0x3e   :  { %1444 = vmatprep.subr.mxu1 %v69_v62  ;;  %v118_v61 = vld [vmem:[%s3075_s2 + $0x308] sm:$0xff]  ;;  %v101_v62 = vld [vmem:[%s3075_s2 + $0x280] sm:$0xff] }
  0x40   :  { %1411 = vmatpush3.xpose.msra.mxu0 %v21_v63  ;;  %v133_v63 = vld [vmem:[%s3075_s2 + $0x380] sm:$0xff] }
  0x41   :  { %1445 = vmatpush3.xpose.msra.mxu1 %v53_v0  ;;  %1448 = vmatprep.subr.mxu0 %v116_v1  ;;  %v85_v0 = vld [vmem:[%s3075_s2 + $0x200] sm:$0xff] }
  0x42   :  { %1482 = vmatprep.subr.mxu1 %v148_v2  ;;  %v117_v1 = vld [vmem:[%s3075_s2 + $0x300] sm:$0xff]  ;;  %v180_v2 = vld [vmem:[%s3075_s2 + $0x4f8] sm:$0xff] }
  0x43   :  { %1413 = vmatmul.mubr.f32.vlgmr.msra.gmra.mxu0 %v1822_v26 }
  0x44   :  { %1447 = vmatmul.mubr.f32.vlgmr.msra.gmra.mxu1 %v1822_v26  ;;  %1449 = vmatpush3.xpose.msra.mxu0 %v100_v3  ;;  %v212_v3 = vld [vmem:[%s3075_s2 + $0x5f8] sm:$0xff] }
  0x45   :  { %1483 = vmatpush3.xpose.msra.mxu1 %v132_v4  ;;  %1450 = vmatprep.subr.mxu0 %v115_v5  ;;  %v164_v4 = vld [vmem:[%s3075_s2 + $0x478] sm:$0xff] }
  0x46   :  { %1484 = vmatprep.subr.mxu1 %v147_v6  ;;  %1480 = vmatprep.mubr.f32.mxu0 %v1822_v26  ;;  %v196_v5 = vld [vmem:[%s3075_s2 + $0x578] sm:$0xff]  ;;  %v179_v6 = vld [vmem:[%s3075_s2 + $0x4f0] sm:$0xff] }
  0x47   :  { %1514 = vmatprep.mubr.f32.mxu1 %v1822_v26 }
  0x48   :  { %1451 = vmatpush3.xpose.msra.mxu0 %v99_v7  ;;  %v211_v7 = vld [vmem:[%s3075_s2 + $0x5f0] sm:$0xff] }
  0x49   :  { %1485 = vmatpush3.xpose.msra.mxu1 %v131_v8  ;;  %1452 = vmatprep.subr.mxu0 %v114_v9  ;;  %v163_v8 = vld [vmem:[%s3075_s2 + $0x470] sm:$0xff] }
  0x4a   :  { %1486 = vmatprep.subr.mxu1 %v146_v10  ;;  %v195_v9 = vld [vmem:[%s3075_s2 + $0x570] sm:$0xff]  ;;  %v178_v10 = vld [vmem:[%s3075_s2 + $0x4e8] sm:$0xff] }
  0x4c   :  { %1453 = vmatpush3.xpose.msra.mxu0 %v98_v11  ;;  %v210_v11 = vld [vmem:[%s3075_s2 + $0x5e8] sm:$0xff] }
  0x4d   :  { %1487 = vmatpush3.xpose.msra.mxu1 %v130_v12  ;;  %1454 = vmatprep.subr.mxu0 %v113_v13  ;;  %v162_v12 = vld [vmem:[%s3075_s2 + $0x468] sm:$0xff] }
  0x4e   :  { %1488 = vmatprep.subr.mxu1 %v145_v14  ;;  %v194_v13 = vld [vmem:[%s3075_s2 + $0x568] sm:$0xff]  ;;  %v177_v14 = vld [vmem:[%s3075_s2 + $0x4e0] sm:$0xff] }
  0x50   :  { %1455 = vmatpush3.xpose.msra.mxu0 %v97_v15  ;;  %v209_v15 = vld [vmem:[%s3075_s2 + $0x5e0] sm:$0xff] }
  0x51   :  { %1489 = vmatpush3.xpose.msra.mxu1 %v129_v16  ;;  %1456 = vmatprep.subr.mxu0 %v112_v17  ;;  %v161_v16 = vld [vmem:[%s3075_s2 + $0x460] sm:$0xff] }
  0x52   :  { %1490 = vmatprep.subr.mxu1 %v144_v18  ;;  %v193_v17 = vld [vmem:[%s3075_s2 + $0x560] sm:$0xff]  ;;  %v176_v18 = vld [vmem:[%s3075_s2 + $0x4d8] sm:$0xff] }
  0x54   :  { %1457 = vmatpush3.xpose.msra.mxu0 %v96_v19  ;;  %v208_v19 = vld [vmem:[%s3075_s2 + $0x5d8] sm:$0xff] }
  0x55   :  { %1491 = vmatpush3.xpose.msra.mxu1 %v128_v20  ;;  %1458 = vmatprep.subr.mxu0 %v111_v21  ;;  %v160_v20 = vld [vmem:[%s3075_s2 + $0x458] sm:$0xff] }
  0x56   :  { %1492 = vmatprep.subr.mxu1 %v143_v22  ;;  %v192_v21 = vld [vmem:[%s3075_s2 + $0x558] sm:$0xff]  ;;  %v175_v22 = vld [vmem:[%s3075_s2 + $0x4d0] sm:$0xff] }
  0x58   :  { %1459 = vmatpush3.xpose.msra.mxu0 %v95_v23  ;;  %v207_v23 = vld [vmem:[%s3075_s2 + $0x5d0] sm:$0xff] }
  0x59   :  { %1493 = vmatpush3.xpose.msra.mxu1 %v127_v24  ;;  %1460 = vmatprep.subr.mxu0 %v110_v25  ;;  %v159_v24 = vld [vmem:[%s3075_s2 + $0x450] sm:$0xff] }
  0x5a   :  { %1494 = vmatprep.subr.mxu1 %v142_v27  ;;  %v191_v25 = vld [vmem:[%s3075_s2 + $0x550] sm:$0xff]  ;;  %v174_v27 = vld [vmem:[%s3075_s2 + $0x4c8] sm:$0xff] }
  0x5c   :  { %1461 = vmatpush3.xpose.msra.mxu0 %v94_v28  ;;  %v206_v28 = vld [vmem:[%s3075_s2 + $0x5c8] sm:$0xff] }
  0x5d   :  { %1495 = vmatpush3.xpose.msra.mxu1 %v126_v29  ;;  %1462 = vmatprep.subr.mxu0 %v109_v30  ;;  %v158_v29 = vld [vmem:[%s3075_s2 + $0x448] sm:$0xff] }
  0x5e   :  { %1496 = vmatprep.subr.mxu1 %v141_v31  ;;  %v190_v30 = vld [vmem:[%s3075_s2 + $0x548] sm:$0xff]  ;;  %v173_v31 = vld [vmem:[%s3075_s2 + $0x4c0] sm:$0xff] }
  0x60   :  { %1463 = vmatpush3.xpose.msra.mxu0 %v93_v32  ;;  %v205_v32 = vld [vmem:[%s3075_s2 + $0x5c0] sm:$0xff] }
  0x61   :  { %1497 = vmatpush3.xpose.msra.mxu1 %v125_v33  ;;  %1464 = vmatprep.subr.mxu0 %v108_v34  ;;  %v157_v33 = vld [vmem:[%s3075_s2 + $0x440] sm:$0xff] }
  0x62   :  { %1498 = vmatprep.subr.mxu1 %v140_v35  ;;  %v189_v34 = vld [vmem:[%s3075_s2 + $0x540] sm:$0xff]  ;;  %v172_v35 = vld [vmem:[%s3075_s2 + $0x4b8] sm:$0xff] }
  0x64   :  { %1465 = vmatpush3.xpose.msra.mxu0 %v92_v36  ;;  %v204_v36 = vld [vmem:[%s3075_s2 + $0x5b8] sm:$0xff] }
  0x65   :  { %1499 = vmatpush3.xpose.msra.mxu1 %v124_v37  ;;  %1466 = vmatprep.subr.mxu0 %v107_v38  ;;  %v156_v37 = vld [vmem:[%s3075_s2 + $0x438] sm:$0xff] }
  0x66   :  { %1500 = vmatprep.subr.mxu1 %v139_v39  ;;  %v188_v38 = vld [vmem:[%s3075_s2 + $0x538] sm:$0xff]  ;;  %v171_v39 = vld [vmem:[%s3075_s2 + $0x4b0] sm:$0xff] }
  0x68   :  { %1467 = vmatpush3.xpose.msra.mxu0 %v91_v40  ;;  %v203_v40 = vld [vmem:[%s3075_s2 + $0x5b0] sm:$0xff] }
  0x69   :  { %1501 = vmatpush3.xpose.msra.mxu1 %v123_v41  ;;  %1468 = vmatprep.subr.mxu0 %v106_v42  ;;  %v155_v41 = vld [vmem:[%s3075_s2 + $0x430] sm:$0xff] }
  0x6a   :  { %1502 = vmatprep.subr.mxu1 %v138_v43  ;;  %v187_v42 = vld [vmem:[%s3075_s2 + $0x530] sm:$0xff]  ;;  %v170_v43 = vld [vmem:[%s3075_s2 + $0x4a8] sm:$0xff] }
  0x6c   :  { %1469 = vmatpush3.xpose.msra.mxu0 %v90_v44  ;;  %v202_v44 = vld [vmem:[%s3075_s2 + $0x5a8] sm:$0xff] }
  0x6d   :  { %1503 = vmatpush3.xpose.msra.mxu1 %v122_v45  ;;  %1470 = vmatprep.subr.mxu0 %v105_v46  ;;  %v154_v45 = vld [vmem:[%s3075_s2 + $0x428] sm:$0xff] }
  0x6e   :  { %1504 = vmatprep.subr.mxu1 %v137_v47  ;;  %v186_v46 = vld [vmem:[%s3075_s2 + $0x528] sm:$0xff]  ;;  %v169_v47 = vld [vmem:[%s3075_s2 + $0x4a0] sm:$0xff] }
  0x70   :  { %1471 = vmatpush3.xpose.msra.mxu0 %v89_v48  ;;  %v201_v48 = vld [vmem:[%s3075_s2 + $0x5a0] sm:$0xff] }
  0x71   :  { %1505 = vmatpush3.xpose.msra.mxu1 %v121_v49  ;;  %1472 = vmatprep.subr.mxu0 %v104_v50  ;;  %v153_v49 = vld [vmem:[%s3075_s2 + $0x420] sm:$0xff] }
  0x72   :  { %1506 = vmatprep.subr.mxu1 %v136_v51  ;;  %v185_v50 = vld [vmem:[%s3075_s2 + $0x520] sm:$0xff]  ;;  %v168_v51 = vld [vmem:[%s3075_s2 + $0x498] sm:$0xff] }
  0x74   :  { %1473 = vmatpush3.xpose.msra.mxu0 %v88_v52  ;;  %v200_v52 = vld [vmem:[%s3075_s2 + $0x598] sm:$0xff] }
  0x75   :  { %1507 = vmatpush3.xpose.msra.mxu1 %v120_v53  ;;  %1474 = vmatprep.subr.mxu0 %v103_v54  ;;  %v152_v53 = vld [vmem:[%s3075_s2 + $0x418] sm:$0xff] }
  0x76   :  { %1508 = vmatprep.subr.mxu1 %v135_v55  ;;  %v184_v54 = vld [vmem:[%s3075_s2 + $0x518] sm:$0xff]  ;;  %v167_v55 = vld [vmem:[%s3075_s2 + $0x490] sm:$0xff] }
  0x78   :  { %1475 = vmatpush3.xpose.msra.mxu0 %v87_v56  ;;  %v199_v56 = vld [vmem:[%s3075_s2 + $0x590] sm:$0xff] }
  0x79   :  { %1509 = vmatpush3.xpose.msra.mxu1 %v119_v57  ;;  %1476 = vmatprep.subr.mxu0 %v102_v58  ;;  %v151_v57 = vld [vmem:[%s3075_s2 + $0x410] sm:$0xff] }
  0x7a   :  { %1510 = vmatprep.subr.mxu1 %v134_v59  ;;  %v183_v58 = vld [vmem:[%s3075_s2 + $0x510] sm:$0xff]  ;;  %v166_v59 = vld [vmem:[%s3075_s2 + $0x488] sm:$0xff] }
  0x7c   :  { %1477 = vmatpush3.xpose.msra.mxu0 %v86_v60  ;;  %v198_v60 = vld [vmem:[%s3075_s2 + $0x588] sm:$0xff] }
  0x7d   :  { %1511 = vmatpush3.xpose.msra.mxu1 %v118_v61  ;;  %1478 = vmatprep.subr.mxu0 %v101_v62  ;;  %v150_v61 = vld [vmem:[%s3075_s2 + $0x408] sm:$0xff] }
  0x7e   :  { %1512 = vmatprep.subr.mxu1 %v133_v63  ;;  %v182_v62 = vld [vmem:[%s3075_s2 + $0x508] sm:$0xff]  ;;  %v165_v63 = vld [vmem:[%s3075_s2 + $0x480] sm:$0xff] }
  0x80   :  { %1479 = vmatpush3.xpose.msra.mxu0 %v85_v0  ;;  %v197_v0 = vld [vmem:[%s3075_s2 + $0x580] sm:$0xff] }
  0x81   :  { %1513 = vmatpush3.xpose.msra.mxu1 %v117_v1  ;;  %1516 = vmatprep.subr.mxu0 %v180_v2  ;;  %v149_v1 = vld [vmem:[%s3075_s2 + $0x400] sm:$0xff] }
  0x82   :  { %1550 = vmatprep.subr.mxu1 %v212_v3  ;;  %v181_v2 = vld [vmem:[%s3075_s2 + $0x500] sm:$0xff]  ;;  %v244_v3 = vld [vmem:[%s3075_s2 + $0x6f8] sm:$0xff] }
  0x83   :  { %1481 = vmatmul.mubr.f32.vlgmr.msra.gmra.mxu0 %v1822_v26 }
  0x84   :  { %1515 = vmatmul.mubr.f32.vlgmr.msra.gmra.mxu1 %v1822_v26  ;;  %1517 = vmatpush3.xpose.msra.mxu0 %v164_v4  ;;  %v276_v4 = vld [vmem:[%s3075_s2 + $0x7f8] sm:$0xff] }
  0x85   :  { %1551 = vmatpush3.xpose.msra.mxu1 %v196_v5  ;;  %1518 = vmatprep.subr.mxu0 %v179_v6  ;;  %v228_v5 = vld [vmem:[%s3075_s2 + $0x678] sm:$0xff] }
  0x86   :  { %1552 = vmatprep.subr.mxu1 %v211_v7  ;;  %1548 = vmatprep.mubr.f32.mxu0 %v1822_v26  ;;  %v260_v6 = vld [vmem:[%s3075_s2 + $0x778] sm:$0xff]  ;;  %v243_v7 = vld [vmem:[%s3075_s2 + $0x6f0] sm:$0xff] }
  0x87   :  { %1582 = vmatprep.mubr.f32.mxu1 %v1822_v26 }
  0x88   :  { %1519 = vmatpush3.xpose.msra.mxu0 %v163_v8  ;;  %v275_v8 = vld [vmem:[%s3075_s2 + $0x7f0] sm:$0xff] }
  0x89   :  { %1553 = vmatpush3.xpose.msra.mxu1 %v195_v9  ;;  %1520 = vmatprep.subr.mxu0 %v178_v10  ;;  %v227_v9 = vld [vmem:[%s3075_s2 + $0x670] sm:$0xff] }
  0x8a   :  { %1554 = vmatprep.subr.mxu1 %v210_v11  ;;  %v259_v10 = vld [vmem:[%s3075_s2 + $0x770] sm:$0xff]  ;;  %v242_v11 = vld [vmem:[%s3075_s2 + $0x6e8] sm:$0xff] }
  0x8c   :  { %1521 = vmatpush3.xpose.msra.mxu0 %v162_v12  ;;  %v274_v12 = vld [vmem:[%s3075_s2 + $0x7e8] sm:$0xff] }
  0x8d   :  { %1555 = vmatpush3.xpose.msra.mxu1 %v194_v13  ;;  %1522 = vmatprep.subr.mxu0 %v177_v14  ;;  %v226_v13 = vld [vmem:[%s3075_s2 + $0x668] sm:$0xff] }
  0x8e   :  { %1556 = vmatprep.subr.mxu1 %v209_v15  ;;  %v258_v14 = vld [vmem:[%s3075_s2 + $0x768] sm:$0xff]  ;;  %v241_v15 = vld [vmem:[%s3075_s2 + $0x6e0] sm:$0xff] }
  0x90   :  { %1523 = vmatpush3.xpose.msra.mxu0 %v161_v16  ;;  %v273_v16 = vld [vmem:[%s3075_s2 + $0x7e0] sm:$0xff] }
  0x91   :  { %1557 = vmatpush3.xpose.msra.mxu1 %v193_v17  ;;  %1524 = vmatprep.subr.mxu0 %v176_v18  ;;  %v225_v17 = vld [vmem:[%s3075_s2 + $0x660] sm:$0xff] }
  0x92   :  { %1558 = vmatprep.subr.mxu1 %v208_v19  ;;  %v257_v18 = vld [vmem:[%s3075_s2 + $0x760] sm:$0xff]  ;;  %v240_v19 = vld [vmem:[%s3075_s2 + $0x6d8] sm:$0xff] }
  0x94   :  { %1525 = vmatpush3.xpose.msra.mxu0 %v160_v20  ;;  %v272_v20 = vld [vmem:[%s3075_s2 + $0x7d8] sm:$0xff] }
  0x95   :  { %1559 = vmatpush3.xpose.msra.mxu1 %v192_v21  ;;  %1526 = vmatprep.subr.mxu0 %v175_v22  ;;  %v224_v21 = vld [vmem:[%s3075_s2 + $0x658] sm:$0xff] }
  0x96   :  { %1560 = vmatprep.subr.mxu1 %v207_v23  ;;  %v256_v22 = vld [vmem:[%s3075_s2 + $0x758] sm:$0xff]  ;;  %v239_v23 = vld [vmem:[%s3075_s2 + $0x6d0] sm:$0xff] }
  0x98   :  { %1527 = vmatpush3.xpose.msra.mxu0 %v159_v24  ;;  %v271_v24 = vld [vmem:[%s3075_s2 + $0x7d0] sm:$0xff] }
  0x99   :  { %1561 = vmatpush3.xpose.msra.mxu1 %v191_v25  ;;  %1528 = vmatprep.subr.mxu0 %v174_v27  ;;  %v223_v25 = vld [vmem:[%s3075_s2 + $0x650] sm:$0xff] }
  0x9a   :  { %1562 = vmatprep.subr.mxu1 %v206_v28  ;;  %v255_v27 = vld [vmem:[%s3075_s2 + $0x750] sm:$0xff]  ;;  %v238_v28 = vld [vmem:[%s3075_s2 + $0x6c8] sm:$0xff] }
  0x9c   :  { %1529 = vmatpush3.xpose.msra.mxu0 %v158_v29  ;;  %v270_v29 = vld [vmem:[%s3075_s2 + $0x7c8] sm:$0xff] }
  0x9d   :  { %1563 = vmatpush3.xpose.msra.mxu1 %v190_v30  ;;  %1530 = vmatprep.subr.mxu0 %v173_v31  ;;  %v222_v30 = vld [vmem:[%s3075_s2 + $0x648] sm:$0xff] }
  0x9e   :  { %1564 = vmatprep.subr.mxu1 %v205_v32  ;;  %v254_v31 = vld [vmem:[%s3075_s2 + $0x748] sm:$0xff]  ;;  %v237_v32 = vld [vmem:[%s3075_s2 + $0x6c0] sm:$0xff] }
  0xa0   :  { %1531 = vmatpush3.xpose.msra.mxu0 %v157_v33  ;;  %v269_v33 = vld [vmem:[%s3075_s2 + $0x7c0] sm:$0xff] }
  0xa1   :  { %1565 = vmatpush3.xpose.msra.mxu1 %v189_v34  ;;  %1532 = vmatprep.subr.mxu0 %v172_v35  ;;  %v221_v34 = vld [vmem:[%s3075_s2 + $0x640] sm:$0xff] }
  0xa2   :  { %1566 = vmatprep.subr.mxu1 %v204_v36  ;;  %v253_v35 = vld [vmem:[%s3075_s2 + $0x740] sm:$0xff]  ;;  %v236_v36 = vld [vmem:[%s3075_s2 + $0x6b8] sm:$0xff] }
  0xa4   :  { %1533 = vmatpush3.xpose.msra.mxu0 %v156_v37  ;;  %v268_v37 = vld [vmem:[%s3075_s2 + $0x7b8] sm:$0xff] }
  0xa5   :  { %1567 = vmatpush3.xpose.msra.mxu1 %v188_v38  ;;  %1534 = vmatprep.subr.mxu0 %v171_v39  ;;  %v220_v38 = vld [vmem:[%s3075_s2 + $0x638] sm:$0xff] }
  0xa6   :  { %1568 = vmatprep.subr.mxu1 %v203_v40  ;;  %v252_v39 = vld [vmem:[%s3075_s2 + $0x738] sm:$0xff]  ;;  %v235_v40 = vld [vmem:[%s3075_s2 + $0x6b0] sm:$0xff] }
  0xa8   :  { %1535 = vmatpush3.xpose.msra.mxu0 %v155_v41  ;;  %v267_v41 = vld [vmem:[%s3075_s2 + $0x7b0] sm:$0xff] }
  0xa9   :  { %1569 = vmatpush3.xpose.msra.mxu1 %v187_v42  ;;  %1536 = vmatprep.subr.mxu0 %v170_v43  ;;  %v219_v42 = vld [vmem:[%s3075_s2 + $0x630] sm:$0xff] }
  0xaa   :  { %1570 = vmatprep.subr.mxu1 %v202_v44  ;;  %v251_v43 = vld [vmem:[%s3075_s2 + $0x730] sm:$0xff]  ;;  %v234_v44 = vld [vmem:[%s3075_s2 + $0x6a8] sm:$0xff] }
  0xac   :  { %1537 = vmatpush3.xpose.msra.mxu0 %v154_v45  ;;  %v266_v45 = vld [vmem:[%s3075_s2 + $0x7a8] sm:$0xff] }
  0xad   :  { %1571 = vmatpush3.xpose.msra.mxu1 %v186_v46  ;;  %1538 = vmatprep.subr.mxu0 %v169_v47  ;;  %v218_v46 = vld [vmem:[%s3075_s2 + $0x628] sm:$0xff] }
  0xae   :  { %1572 = vmatprep.subr.mxu1 %v201_v48  ;;  %v250_v47 = vld [vmem:[%s3075_s2 + $0x728] sm:$0xff]  ;;  %v233_v48 = vld [vmem:[%s3075_s2 + $0x6a0] sm:$0xff] }
  0xb0   :  { %1539 = vmatpush3.xpose.msra.mxu0 %v153_v49  ;;  %v265_v49 = vld [vmem:[%s3075_s2 + $0x7a0] sm:$0xff] }
  0xb1   :  { %1573 = vmatpush3.xpose.msra.mxu1 %v185_v50  ;;  %1540 = vmatprep.subr.mxu0 %v168_v51  ;;  %v217_v50 = vld [vmem:[%s3075_s2 + $0x620] sm:$0xff] }
  0xb2   :  { %1574 = vmatprep.subr.mxu1 %v200_v52  ;;  %v249_v51 = vld [vmem:[%s3075_s2 + $0x720] sm:$0xff]  ;;  %v232_v52 = vld [vmem:[%s3075_s2 + $0x698] sm:$0xff] }
  0xb4   :  { %1541 = vmatpush3.xpose.msra.mxu0 %v152_v53  ;;  %v264_v53 = vld [vmem:[%s3075_s2 + $0x798] sm:$0xff] }
  0xb5   :  { %1575 = vmatpush3.xpose.msra.mxu1 %v184_v54  ;;  %1542 = vmatprep.subr.mxu0 %v167_v55  ;;  %v216_v54 = vld [vmem:[%s3075_s2 + $0x618] sm:$0xff] }
  0xb6   :  { %1576 = vmatprep.subr.mxu1 %v199_v56  ;;  %v248_v55 = vld [vmem:[%s3075_s2 + $0x718] sm:$0xff]  ;;  %v231_v56 = vld [vmem:[%s3075_s2 + $0x690] sm:$0xff] }
  0xb8   :  { %1543 = vmatpush3.xpose.msra.mxu0 %v151_v57  ;;  %v263_v57 = vld [vmem:[%s3075_s2 + $0x790] sm:$0xff] }
  0xb9   :  { %1577 = vmatpush3.xpose.msra.mxu1 %v183_v58  ;;  %1544 = vmatprep.subr.mxu0 %v166_v59  ;;  %v3079_v58 = vlaneseq  ;;  %v215_v59 = vld [vmem:[%s3075_s2 + $0x610] sm:$0xff] }
  0xba   :  { %1578 = vmatprep.subr.mxu1 %v198_v60  ;;  %v247_v60 = vld [vmem:[%s3075_s2 + $0x710] sm:$0xff] }
  0xbc   :  { %1545 = vmatpush3.xpose.msra.mxu0 %v150_v61  ;;  %v230_v61 = vld [vmem:[%s3075_s2 + $0x688] sm:$0xff] }
  0xbd   :  { %1579 = vmatpush3.xpose.msra.mxu1 %v182_v62  ;;  %1546 = vmatprep.subr.mxu0 %v165_v63  ;;  %v262_v62 = vld [vmem:[%s3075_s2 + $0x788] sm:$0xff]  ;;  %v2511_v63 = vshrl.u32 %v3079_v58, 7 }
  0xbe   :  { %1580 = vmatprep.subr.mxu1 %v197_v0  ;;  %v214_v0 = vld [vmem:[%s3075_s2 + $0x608] sm:$0xff] }
  0xc0   :  { %1547 = vmatpush3.xpose.msra.mxu0 %v149_v1  ;;  %v246_v1 = vld [vmem:[%s3075_s2 + $0x708] sm:$0xff] }
  0xc1   :  { %1581 = vmatpush3.xpose.msra.mxu1 %v181_v2  ;;  %1584 = vmatprep.subr.mxu0 %v244_v3  ;;  %v229_v2 = vld [vmem:[%s3075_s2 + $0x680] sm:$0xff] }
  0xc2   :  { %1618 = vmatprep.subr.mxu1 %v276_v4  ;;  %v261_v3 = vld [vmem:[%s3075_s2 + $0x780] sm:$0xff]  ;;  %v851_v4 = vsub.s32 0, %v2511_v63 }
  0xc3   :  { %1549 = vmatmul.mubr.f32.vlgmr.msra.gmra.mxu0 %v1822_v26 }
  0xc4   :  { %1583 = vmatmul.mubr.f32.vlgmr.msra.gmra.mxu1 %v1822_v26  ;;  %1585 = vmatpush3.xpose.msra.mxu0 %v228_v5  ;;  %v859_v5 = vsub.s32 2, %v2511_v63 }
  0xc5   :  { %1619 = vmatpush3.xpose.msra.mxu1 %v260_v6  ;;  %1586 = vmatprep.subr.mxu0 %v243_v7  ;;  %v213_v6 = vld [vmem:[%s3075_s2 + $0x600] sm:$0xff] }
  0xc6   :  { %1620 = vmatprep.subr.mxu1 %v275_v8  ;;  %1616 = vmatprep.mubr.f32.mxu0 %v1822_v26  ;;  %v245_v7 = vld [vmem:[%s3075_s2 + $0x700] sm:$0xff] }
  0xc7   :  { %1650 = vmatprep.mubr.f32.mxu1 %v1822_v26  ;;  %v845_v8 = vld [vmem:[%s3076_s3] sm:$0xff] }
  0xc8   :  { %1587 = vmatpush3.xpose.msra.mxu0 %v227_v9  ;;  %v855_v9 = vsub.s32 1, %v2511_v63 }
  0xc9   :  { %1621 = vmatpush3.xpose.msra.mxu1 %v259_v10  ;;  %1588 = vmatprep.subr.mxu0 %v242_v11  ;;  %v863_v10 = vsub.s32 3, %v2511_v63  ;;  %v852_v11 = vrot.slane %v845_v8, %v851_v4 }
  0xca   :  { %1622 = vmatprep.subr.mxu1 %v274_v12  ;;  %v860_v12 = vrot.slane %v845_v8, %v859_v5 }
  0xcc   :  { %1589 = vmatpush3.xpose.msra.mxu0 %v226_v13  ;;  %v856_v13 = vrot.slane %v845_v8, %v855_v9 }
  0xcd   :  { %1623 = vmatpush3.xpose.msra.mxu1 %v258_v14  ;;  %1590 = vmatprep.subr.mxu0 %v241_v15  ;;  %v864_v14 = vrot.slane %v845_v8, %v863_v10 }
  0xce   :  { %1624 = vmatprep.subr.mxu1 %v273_v16 }
  0xd0   :  { %1591 = vmatpush3.xpose.msra.mxu0 %v225_v17 }
  0xd1   :  { %1625 = vmatpush3.xpose.msra.mxu1 %v257_v18  ;;  %1592 = vmatprep.subr.mxu0 %v240_v19 }
  0xd2   :  { %1626 = vmatprep.subr.mxu1 %v272_v20 }
  0xd4   :  { %1593 = vmatpush3.xpose.msra.mxu0 %v224_v21 }
  0xd5   :  { %1627 = vmatpush3.xpose.msra.mxu1 %v256_v22  ;;  %1594 = vmatprep.subr.mxu0 %v239_v23  ;;  %v867_v23 = vsub.s32 4, %v2511_v63 }
  0xd6   :  { %1628 = vmatprep.subr.mxu1 %v271_v24  ;;  %v875_v24 = vsub.s32 6, %v2511_v63 }
  0xd8   :  { %1595 = vmatpush3.xpose.msra.mxu0 %v223_v25  ;;  %v871_v25 = vsub.s32 5, %v2511_v63 }
  0xd9   :  { %1629 = vmatpush3.xpose.msra.mxu1 %v255_v27  ;;  %1596 = vmatprep.subr.mxu0 %v238_v28  ;;  %v879_v27 = vsub.s32 7, %v2511_v63  ;;  %v868_v28 = vrot.slane %v845_v8, %v867_v23 }
  0xda   :  { %1630 = vmatprep.subr.mxu1 %v270_v29  ;;  %v872_v29 = vrot.slane %v845_v8, %v871_v25 }
  0xdc   :  { %1597 = vmatpush3.xpose.msra.mxu0 %v222_v30  ;;  %v880_v30 = vrot.slane %v845_v8, %v879_v27 }
  0xdd   :  { %1631 = vmatpush3.xpose.msra.mxu1 %v254_v31  ;;  %1598 = vmatprep.subr.mxu0 %v237_v32 }
  0xde   :  { %1632 = vmatprep.subr.mxu1 %v269_v33 }
  0xe0   :  { %1599 = vmatpush3.xpose.msra.mxu0 %v221_v34 }
  0xe1   :  { %1633 = vmatpush3.xpose.msra.mxu1 %v253_v35  ;;  %1600 = vmatprep.subr.mxu0 %v236_v36 }
  0xe2   :  { %1634 = vmatprep.subr.mxu1 %v268_v37 }
  0xe4   :  { %1601 = vmatpush3.xpose.msra.mxu0 %v220_v38 }
  0xe5   :  { %1635 = vmatpush3.xpose.msra.mxu1 %v252_v39  ;;  %1602 = vmatprep.subr.mxu0 %v235_v40  ;;  %v846_v39 = vld [vmem:[%s3076_s3 + $0x8] sm:$0xff] }
  0xe6   :  { %1636 = vmatprep.subr.mxu1 %v267_v41  ;;  %v884_v40 = vrot.slane %v846_v39, %v851_v4  ;;  %v892_v41 = vrot.slane %v846_v39, %v859_v5 }
  0xe8   :  { %1603 = vmatpush3.xpose.msra.mxu0 %v219_v42  ;;  %v888_v42 = vrot.slane %v846_v39, %v855_v9 }
  0xe9   :  { %1637 = vmatpush3.xpose.msra.mxu1 %v251_v43  ;;  %1604 = vmatprep.subr.mxu0 %v234_v44  ;;  %v896_v43 = vrot.slane %v846_v39, %v863_v10 }
  0xea   :  { %1638 = vmatprep.subr.mxu1 %v266_v45 }
  0xec   :  { %1605 = vmatpush3.xpose.msra.mxu0 %v218_v46 }
  0xed   :  { %1639 = vmatpush3.xpose.msra.mxu1 %v250_v47  ;;  %1606 = vmatprep.subr.mxu0 %v233_v48 }
  0xee   :  { %1640 = vmatprep.subr.mxu1 %v265_v49 }
  0xf0   :  { %1607 = vmatpush3.xpose.msra.mxu0 %v217_v50 }
  0xf1   :  { %1641 = vmatpush3.xpose.msra.mxu1 %v249_v51  ;;  %1608 = vmatprep.subr.mxu0 %v232_v52  ;;  %v900_v52 = vrot.slane %v846_v39, %v867_v23 }
  0xf2   :  { %1642 = vmatprep.subr.mxu1 %v264_v53  ;;  %v908_v53 = vrot.slane %v846_v39, %v875_v24 }
  0xf4   :  { %1609 = vmatpush3.xpose.msra.mxu0 %v216_v54  ;;  %v904_v54 = vrot.slane %v846_v39, %v871_v25 }
  0xf5   :  { %1643 = vmatpush3.xpose.msra.mxu1 %v248_v55  ;;  %1610 = vmatprep.subr.mxu0 %v231_v56  ;;  %v912_v55 = vrot.slane %v846_v39, %v879_v27 }
  0xf6   :  { %1644 = vmatprep.subr.mxu1 %v263_v57 }
  0xf8   :  { %1611 = vmatpush3.xpose.msra.mxu0 %v215_v59 }
  0xf9   :  { %1645 = vmatpush3.xpose.msra.mxu1 %v247_v60  ;;  %1612 = vmatprep.subr.mxu0 %v230_v61 }
  0xfa   :  { %1646 = vmatprep.subr.mxu1 %v262_v62 }
  0xfc   :  { %1613 = vmatpush3.xpose.msra.mxu0 %v214_v0 }
  0xfd   :  { %1647 = vmatpush3.xpose.msra.mxu1 %v246_v1  ;;  %1614 = vmatprep.subr.mxu0 %v229_v2 }
  0xfe   :  { %1648 = vmatprep.subr.mxu1 %v261_v3 }
 0x100   :  { %1615 = vmatpush3.xpose.msra.mxu0 %v213_v6 }
 0x101   :  { %1649 = vmatpush3.xpose.msra.mxu1 %v245_v7 }
 0x103   :  { %v343_v15 = vpop.f32.mrf.mxu0  ;;  %1617 = vmatmul.mubr.f32.vlgmr.msra.gmra.mxu0 %v1822_v26 }
 0x104   :  { %v414_v16 = vpop.f32.mrf.mxu1  ;;  %1651 = vmatmul.mubr.f32.vlgmr.msra.gmra.mxu1 %v1822_v26  ;;  %v2540_v17 = vmul.f32 %v852_v11, %v343_v15  ;;  %v876_v26 = vrot.slane %v845_v8, %v875_v24 }
 0x105   :  { %v2542_v18 = vmul.f32 %v860_v12, %v414_v16  ;;  %v345_v19 = vpop.f32.mrf.mxu0 }
 0x106   :  { %v416_v20 = vpop.f32.mrf.mxu1  ;;  %v2544_v21 = vmul.f32 %v856_v13, %v345_v19 }
 0x107   :  { %v2546_v22 = vmul.f32 %v864_v14, %v416_v20 }
 0x143   :  { %v485_v31 = vpop.f32.mrf.mxu0 }
 0x144   :  { %v556_v32 = vpop.f32.mrf.mxu1  ;;  %v2552_v33 = vmul.f32 %v868_v28, %v485_v31 }
 0x145   :  { %v2554_v34 = vmul.f32 %v876_v26, %v556_v32  ;;  %v487_v35 = vpop.f32.mrf.mxu0 }
 0x146   :  { %v558_v36 = vpop.f32.mrf.mxu1  ;;  %v2556_v37 = vmul.f32 %v872_v29, %v487_v35 }
 0x147   :  { %v2558_v38 = vmul.f32 %v880_v30, %v558_v36 }
 0x183   :  { %v627_v44 = vpop.f32.mrf.mxu0 }
 0x184   :  { %v698_v45 = vpop.f32.mrf.mxu1  ;;  %v2563_v46 = vmul.f32 %v884_v40, %v627_v44 }
 0x185   :  { %v2565_v47 = vmul.f32 %v892_v41, %v698_v45  ;;  %v629_v48 = vpop.f32.mrf.mxu0 }
 0x186   :  { %v700_v49 = vpop.f32.mrf.mxu1  ;;  %v2567_v50 = vmul.f32 %v888_v42, %v629_v48 }
 0x187   :  { %v2569_v51 = vmul.f32 %v896_v43, %v700_v49 }
 0x1c3   :  { %v769_v56 = vpop.f32.mrf.mxu0  ;;  %952 = sbr.rel (%p1362_p0) target bundleno = 466 (0x1d2), region = 21 }
 0x1c4   :  { %v840_v57 = vpop.f32.mrf.mxu1  ;;  %v2571_v59 = vmul.f32 %v900_v52, %v769_v56 }
 0x1c5   :  { %v2573_v60 = vmul.f32 %v908_v53, %v840_v57  ;;  %v771_v61 = vpop.f32.mrf.mxu0 }
 0x1c6   :  { %v842_v62 = vpop.f32.mrf.mxu1  ;;  %v2575_v63 = vmul.f32 %v904_v54, %v771_v61 }
 0x1c7   :  { %v2577_v0 = vmul.f32 %v912_v55, %v842_v62 }
 0x1c8   :  { %v953_v1 = vmul.f32 64.0, %v2540_v17  ;;  %v954_v2 = vmul.f32 64.0, %v2544_v21  ;;  %v955_v3 = vmul.f32 64.0, %v2542_v18  ;;  %v956_v4 = vmul.f32 64.0, %v2546_v22 }
 0x1c9   :  { %v957_v5 = vmul.f32 64.0, %v2552_v33  ;;  %v958_v6 = vmul.f32 64.0, %v2556_v37  ;;  %v959_v7 = vmul.f32 64.0, %v2554_v34  ;;  %v960_v8 = vmul.f32 64.0, %v2558_v38 }
 0x1ca   :  { %969 = vst [vmem:[#allocation4] sm:$0xff] %v953_v1  ;;  %970 = vst [vmem:[#allocation4 + $0x8] sm:$0xff] %v954_v2  ;;  %v961_v9 = vmul.f32 64.0, %v2563_v46  ;;  %v962_v10 = vmul.f32 64.0, %v2567_v50  ;;  %v963_v11 = vmul.f32 64.0, %v2565_v47  ;;  %v964_v12 = vmul.f32 64.0, %v2569_v51 }
 0x1cb   :  { %971 = vst [vmem:[#allocation4 + $0x10] sm:$0xff] %v955_v3  ;;  %972 = vst [vmem:[#allocation4 + $0x18] sm:$0xff] %v956_v4  ;;  %v965_v13 = vmul.f32 64.0, %v2571_v59  ;;  %v966_v14 = vmul.f32 64.0, %v2575_v63  ;;  %v967_v15 = vmul.f32 64.0, %v2573_v60  ;;  %v968_v16 = vmul.f32 64.0, %v2577_v0 }
 0x1cc   :  { %973 = vst [vmem:[#allocation4 + $0x20] sm:$0xff] %v957_v5  ;;  %974 = vst [vmem:[#allocation4 + $0x28] sm:$0xff] %v958_v6 }
 0x1cd   :  { %975 = vst [vmem:[#allocation4 + $0x30] sm:$0xff] %v959_v7  ;;  %976 = vst [vmem:[#allocation4 + $0x38] sm:$0xff] %v960_v8 }
 0x1ce   :  { %977 = vst [vmem:[#allocation4 + $0x40] sm:$0xff] %v961_v9  ;;  %978 = vst [vmem:[#allocation4 + $0x48] sm:$0xff] %v962_v10 }
 0x1cf   :  { %979 = vst [vmem:[#allocation4 + $0x50] sm:$0xff] %v963_v11  ;;  %980 = vst [vmem:[#allocation4 + $0x58] sm:$0xff] %v964_v12 }
 0x1d0   :  { %981 = vst [vmem:[#allocation4 + $0x60] sm:$0xff] %v965_v13  ;;  %982 = vst [vmem:[#allocation4 + $0x68] sm:$0xff] %v966_v14 }
 0x1d1   :  { %983 = vst [vmem:[#allocation4 + $0x70] sm:$0xff] %v967_v15  ;;  %984 = vst [vmem:[#allocation4 + $0x78] sm:$0xff] %v968_v16 }
 0x1d2 PF:  { %p1363_p1 = scmp.eq.s32.totalorder %s3073_s0, 0 }
 0x1d4   :  { %988 = sbr.rel (%p1363_p1) target bundleno = 617 (0x269), region = 25 }
 0x1d9   :  { %v1280_v19 = vld [vmem:[%s3077_s4] sm:$0xff]  ;;  %v1709_v20 = vmov 0   ;;  %v989_v23 = vmul.f32 %v2540_v17, %v2540_v17  ;;  %v990_v24 = vmul.f32 %v2544_v21, %v2544_v21  ;;  %v991_v25 = vmul.f32 %v2542_v18, %v2542_v18 }
 0x1da   :  { %1654 = vset.pattern.permute.xlu0 %v1709_v20  ;;  %v992_v27 = vmul.f32 %v2546_v22, %v2546_v22  ;;  %v993_v28 = vmul.f32 %v2552_v33, %v2552_v33  ;;  %v994_v29 = vmul.f32 %v2556_v37, %v2556_v37  ;;  %v995_v31 = vmul.f32 %v2554_v34, %v2554_v34 }
 0x1db   :  { %1282 = vperm.xlu0 %1654, %v1280_v19   ;;  %v1005_v26 = vsub.f32 1.0, %v989_v23  ;;  %v1006_v30 = vsub.f32 1.0, %v990_v24  ;;  %v1007_v32 = vsub.f32 1.0, %v991_v25  ;;  %v996_v35 = vmul.f32 %v2558_v38, %v2558_v38 }
 0x1dc   :  { %v1008_v36 = vsub.f32 1.0, %v992_v27  ;;  %v997_v39 = vmul.f32 %v2563_v46, %v2563_v46  ;;  %v1009_v40 = vsub.f32 1.0, %v993_v28  ;;  %v998_v42 = vmul.f32 %v2567_v50, %v2567_v50 }
 0x1dd   :  { %v2622_v41 = vmax.f32 %v1005_v26, 0.0  ;;  %v1010_v43 = vsub.f32 1.0, %v994_v29  ;;  %v2626_v44 = vmax.f32 %v1006_v30, 0.0  ;;  %v999_v45 = vmul.f32 %v2565_v47, %v2565_v47 }
 0x1de   :  { %v1011_v48 = vsub.f32 1.0, %v995_v31  ;;  %v2630_v49 = vmax.f32 %v1007_v32, 0.0  ;;  %v1000_v52 = vmul.f32 %v2569_v51, %v2569_v51  ;;  %v1012_v53 = vsub.f32 1.0, %v996_v35 }
 0x1df   :  { %v2634_v54 = vmax.f32 %v1008_v36, 0.0  ;;  %v1001_v55 = vmul.f32 %v2571_v59, %v2571_v59  ;;  %v1013_v56 = vsub.f32 1.0, %v997_v39  ;;  %v2638_v57 = vmax.f32 %v1009_v40, 0.0 }
 0x1e0   :  { %1655 = vrsqrt.f32 %v2622_v41  ;;  %v1014_v61 = vsub.f32 1.0, %v998_v42  ;;  %v2641_v62 = vmax.f32 %v1010_v43, 0.0  ;;  %v1002_v1 = vmul.f32 %v2575_v63, %v2575_v63 }
 0x1e1   :  { %1657 = vrsqrt.f32 %v2626_v44  ;;  %v1015_v2 = vsub.f32 1.0, %v999_v45  ;;  %v2646_v3 = vmax.f32 %v1011_v48, 0.0  ;;  %v1003_v4 = vmul.f32 %v2573_v60, %v2573_v60 }
 0x1e2   :  { %1659 = vrsqrt.f32 %v2630_v49  ;;  %v1016_v5 = vsub.f32 1.0, %v1000_v52  ;;  %v2651_v6 = vmax.f32 %v1012_v53, 0.0  ;;  %v1004_v7 = vmul.f32 %v2577_v0, %v2577_v0 }
 0x1e3   :  { %1661 = vrsqrt.f32 %v2634_v54  ;;  %v1017_v8 = vsub.f32 1.0, %v1001_v55  ;;  %v2656_v9 = vmax.f32 %v1013_v56, 0.0  ;;  %v2659_v10 = vmax.f32 %v1014_v61, 0.0 }
 0x1e4   :  { %1663 = vrsqrt.f32 %v2638_v57  ;;  %v1018_v11 = vsub.f32 1.0, %v1002_v1  ;;  %v2662_v12 = vmax.f32 %v1015_v2, 0.0  ;;  %v1019_v13 = vsub.f32 1.0, %v1003_v4 }
 0x1e5   :  { %1665 = vrsqrt.f32 %v2641_v62  ;;  %v2665_v14 = vmax.f32 %v1016_v5, 0.0  ;;  %v1020_v15 = vsub.f32 1.0, %v1004_v7  ;;  %v2668_v16 = vmax.f32 %v1017_v8, 0.0 }
 0x1e6   :  { %1667 = vrsqrt.f32 %v2646_v3  ;;  %v2672_v19 = vmax.f32 %v1018_v11, 0.0  ;;  %v2675_v20 = vmax.f32 %v1019_v13, 0.0  ;;  %vm1039_vm0 = vcmp.eq.f32.partialorder %v2622_v41, inf }
 0x1e7   :  { %1669 = vrsqrt.f32 %v2651_v6  ;;  %v2678_v23 = vmax.f32 %v1020_v15, 0.0  ;;  %vm1041_vm1 = vcmp.eq.f32.partialorder %v2622_v41, 0.0  ;;  %v1042_v25 = vand.u32 2147483648, %v2622_v41 }
 0x1e8   :  { %1671 = vrsqrt.f32 %v2656_v9  ;;  %vm1046_vm2 = vcmp.eq.f32.partialorder %v2626_v44, inf  ;;  %vm1048_vm3 = vcmp.eq.f32.partialorder %v2626_v44, 0.0  ;;  %v1049_v28 = vand.u32 2147483648, %v2626_v44 }
 0x1e9   :  { %1673 = vrsqrt.f32 %v2659_v10  ;;  %vm1053_vm4 = vcmp.eq.f32.partialorder %v2630_v49, inf  ;;  %vm1055_vm5 = vcmp.eq.f32.partialorder %v2630_v49, 0.0  ;;  %v1056_v29 = vand.u32 2147483648, %v2630_v49 }
 0x1ea   :  { %1675 = vrsqrt.f32 %v2662_v12  ;;  %vm1060_vm6 = vcmp.eq.f32.partialorder %v2634_v54, inf  ;;  %v1063_v31 = vand.u32 2147483648, %v2634_v54  ;;  %vm1067_vm7 = vcmp.eq.f32.partialorder %v2638_v57, inf }
 0x1eb   :  { %1677 = vrsqrt.f32 %v2665_v14  ;;  %v1070_v32 = vand.u32 2147483648, %v2638_v57  ;;  %vm1062_vm8 = vcmp.eq.f32.partialorder %v2634_v54, 0.0  ;;  %vm1074_vm10 = vcmp.eq.f32.partialorder %v2641_v62, inf }
 0x1ec   :  { %1679 = vrsqrt.f32 %v2668_v16  ;;  %v1077_v40 = vand.u32 2147483648, %v2641_v62  ;;  %vm1081_vm12 = vcmp.eq.f32.partialorder %v2646_v3, inf  ;;  %v1084_v43 = vand.u32 2147483648, %v2646_v3 }
 0x1ed   :  { %v1656_v24 = vpop.eup %1655  ;;  %1681 = vrsqrt.f32 %v2672_v19  ;;  %v1091_v45 = vand.u32 2147483648, %v2651_v6  ;;  %vm1083_vm14 = vcmp.eq.f32.partialorder %v2646_v3, 0.0  ;;  %vm1095_vm15 = vcmp.eq.f32.partialorder %v2656_v9, inf }
 0x1ee   :  { %v1658_v27 = vpop.eup %1657  ;;  %1683 = vrsqrt.f32 %v2675_v20  ;;  %v1038_v36 = vmul.f32 %v1656_v24, %v2622_v41  ;;  %v1098_v53 = vand.u32 2147483648, %v2656_v9  ;;  %v1105_v56 = vand.u32 2147483648, %v2659_v10 }
 0x1ef   :  { %v1660_v26 = vpop.eup %1659  ;;  %1685 = vrsqrt.f32 %v2678_v23  ;;  %v1045_v39 = vmul.f32 %v1658_v27, %v2626_v44  ;;  %v1112_v61 = vand.u32 2147483648, %v2662_v12  ;;  %vm1104_vm11 = vcmp.eq.f32.partialorder %v2659_v10, 0.0 }
 0x1f0   :  { %v1662_v30 = vpop.eup %1661  ;;  %v1052_v52 = vmul.f32 %v1660_v26, %v2630_v49  ;;  %v1040_v2 = vsel %vm1039_vm0, %v2622_v41, %v1038_v36  ;;  %v1119_v13 = vand.u32 2147483648, %v2665_v14  ;;  %vm1123_vm0 = vcmp.eq.f32.partialorder %v2668_v16, inf }
 0x1f1   :  { %v1664_v35 = vpop.eup %1663  ;;  %v1047_v4 = vsel %vm1046_vm2, %v2626_v44, %v1045_v39  ;;  %v1059_v5 = vmul.f32 %v1662_v30, %v2634_v54  ;;  %v1126_v15 = vand.u32 2147483648, %v2668_v16  ;;  %vm1118_vm9 = vcmp.eq.f32.partialorder %v2665_v14, 0.0 }
 0x1f2   :  { %v1666_v42 = vpop.eup %1665  ;;  %v1066_v7 = vmul.f32 %v1664_v35, %v2638_v57  ;;  %v1054_v27 = vsel %vm1053_vm4, %v2630_v49, %v1052_v52  ;;  %vm1130_vm13 = vcmp.eq.f32.partialorder %v2672_v19, inf  ;;  %v1133_v30 = vand.u32 2147483648, %v2672_v19 }
 0x1f3   :  { %v1668_v48 = vpop.eup %1667  ;;  %v1073_v11 = vmul.f32 %v1666_v42, %v2641_v62  ;;  %v1043_v36 = vsel %vm1041_vm1, %v1042_v25, %v1040_v2  ;;  %v2746_v39 = vsel %vm1048_vm3, %v1049_v28, %v1047_v4  ;;  %vm1125_vm4 = vcmp.eq.f32.partialorder %v2668_v16, 0.0 }
 0x1f4   :  { %v1670_v55 = vpop.eup %1669  ;;  %v1080_v26 = vmul.f32 %v1668_v48, %v2646_v3  ;;  %vm1137_vm2 = vcmp.eq.f32.partialorder %v2675_v20, inf  ;;  %v1140_v42 = vand.u32 2147483648, %v2675_v20  ;;  %v1061_v58 = vsel %vm1060_vm6, %v2634_v54, %v1059_v5 }
 0x1f5   :  { %v1672_v1 = vpop.eup %1671  ;;  %v1068_v41 = vsel %vm1067_vm7, %v2638_v57, %v1066_v7  ;;  %v1087_v44 = vmul.f32 %v1670_v55, %v2651_v6  ;;  %vm1144_vm1 = vcmp.eq.f32.partialorder %v2678_v23, inf  ;;  %v2761_v25 = vmul.f32 0.87758255, %v2540_v17 }
 0x1f6   :  { %v1674_v8 = vpop.eup %1673  ;;  %v1057_v28 = vsel %vm1055_vm5, %v1056_v29, %v1054_v27  ;;  %v1075_v2 = vsel %vm1074_vm10, %v2641_v62, %v1073_v11  ;;  %v1094_v4 = vmul.f32 %v1672_v1, %v2656_v9  ;;  %vm1132_vm3 = vcmp.eq.f32.partialorder %v2672_v19, 0.0 }
 0x1f7   :  { %v1676_v24 = vpop.eup %1675  ;;  %v1101_v5 = vmul.f32 %v1674_v8, %v2659_v10  ;;  %v1082_v7 = vsel %vm1081_vm12, %v2646_v3, %v1080_v26  ;;  %vm1139_vm5 = vcmp.eq.f32.partialorder %v2675_v20, 0.0  ;;  %v2780_v29 = vmul.f32 0.87758255, %v2544_v21 }
 0x1f8   :  { %v1678_v35 = vpop.eup %1677  ;;  %v1108_v48 = vmul.f32 %v1676_v24, %v2662_v12  ;;  %v1064_v1 = vsel %vm1062_vm8, %v1063_v31, %v1061_v58  ;;  %vm3080_vm6 = vcmp.eq.f32.partialorder %v2638_v57, 0.0  ;;  %vm1146_vm7 = vcmp.eq.f32.partialorder %v2678_v23, 0.0 }
 0x1f9   :  { %v1680_v52 = vpop.eup %1679  ;;  %v1115_v49 = vmul.f32 %v1678_v35, %v2665_v14  ;;  %v1071_v8 = vsel %vm3080_vm6, %v1070_v32, %v1068_v41  ;;  %v2793_v27 = vmul.f32 0.87758255, %v2542_v18  ;;  %vm3081_vm10 = vcmp.eq.f32.partialorder %v2641_v62, 0.0 }
 0x1fa   :  { %v1682_v55 = vpop.eup %1681  ;;  %v1122_v24 = vmul.f32 %v1680_v52, %v2668_v16  ;;  %v1078_v35 = vsel %vm3081_vm10, %v1077_v40, %v1075_v2  ;;  %vm3082_vm8 = vcmp.eq.f32.partialorder %v2651_v6, inf  ;;  %v2803_v54 = vmul.f32 0.87758255, %v2546_v22 }
 0x1fb   :  { %v1684_v11 = vpop.eup %1683  ;;  %v1089_v58 = vsel %vm3082_vm8, %v2651_v6, %v1087_v44  ;;  %v2806_v57 = vmul.f32 0.87758255, %v2552_v33  ;;  %v1085_v31 = vsel %vm1083_vm14, %v1084_v43, %v1082_v7  ;;  %v1096_v62 = vsel %vm1095_vm15, %v2656_v9, %v1094_v4 }
 0x1fc   :  { %v1686_v26 = vpop.eup %1685  ;;  %vm3083_vm12 = vcmp.eq.f32.partialorder %v2659_v10, inf  ;;  %v1129_v40 = vmul.f32 %v1682_v55, %v2672_v19  ;;  %vm3084_vm6 = vcmp.eq.f32.partialorder %v2662_v12, inf  ;;  %vm3085_vm10 = vcmp.eq.f32.partialorder %v2665_v14, inf }
 0x1fd   :  { %v1103_v32 = vsel %vm3083_vm12, %v2659_v10, %v1101_v5  ;;  %v1110_v52 = vsel %vm3084_vm6, %v2662_v12, %v1108_v48  ;;  %v1117_v41 = vsel %vm3085_vm10, %v2665_v14, %v1115_v49  ;;  %v1136_v3 = vmul.f32 %v1684_v11, %v2675_v20 }
 0x1fe   :  { %v2827_v43 = vmul.f32 0.87758255, %v2556_v37  ;;  %vm3086_vm14 = vcmp.eq.f32.partialorder %v2651_v6, 0.0  ;;  %v1124_v2 = vsel %vm1123_vm0, %v2668_v16, %v1122_v24  ;;  %v1143_v48 = vmul.f32 %v1686_v26, %v2678_v23 }
 0x1ff   :  { %v1092_v44 = vsel %vm3086_vm14, %v1091_v45, %v1089_v58  ;;  %v2838_v4 = vmul.f32 0.87758255, %v2554_v34  ;;  %vm3087_vm15 = vcmp.eq.f32.partialorder %v2656_v9, 0.0  ;;  %v1106_v6 = vsel %vm1104_vm11, %v1105_v56, %v1103_v32 }
 0x200   :  { %v1099_v5 = vsel %vm3087_vm15, %v1098_v53, %v1096_v62  ;;  %v2849_v45 = vmul.f32 0.87758255, %v2558_v38  ;;  %v2852_v55 = vmul.f32 0.87758255, %v2563_v46  ;;  %vm3088_vm0 = vcmp.eq.f32.partialorder %v2662_v12, 0.0 }
 0x201   :  { %v1113_v7 = vsel %vm3088_vm0, %v1112_v61, %v1110_v52  ;;  %v1120_v9 = vsel %vm1118_vm9, %v1119_v13, %v1117_v41  ;;  %v1131_v10 = vsel %vm1130_vm13, %v2672_v19, %v1129_v40  ;;  %v2866_v53 = vmul.f32 0.87758255, %v2567_v50 }
 0x202   :  { %v1127_v56 = vsel %vm1125_vm4, %v1126_v15, %v1124_v2  ;;  %v1138_v12 = vsel %vm1137_vm2, %v2675_v20, %v1136_v3  ;;  %v2876_v61 = vmul.f32 0.87758255, %v2565_v47  ;;  %v2879_v14 = vmul.f32 0.87758255, %v2569_v51 }
 0x203   :  { %v1145_v13 = vsel %vm1144_vm1, %v2678_v23, %v1143_v48  ;;  %v2885_v49 = vmul.f32 0.87758255, %v2571_v59  ;;  %v2888_v16 = vmul.f32 0.87758255, %v2575_v63  ;;  %v2890_v15 = vmul.f32 0.47942555, %v1043_v36 }
 0x204   :  { %v1134_v11 = vsel %vm1132_vm3, %v1133_v30, %v1131_v10  ;;  %v2897_v24 = vmul.f32 0.87758255, %v2573_v60  ;;  %v2900_v26 = vmul.f32 0.87758255, %v2577_v0  ;;  %v2903_v58 = vmul.f32 0.47942555, %v2746_v39 }
 0x205   :  { %v1141_v36 = vsel %vm1139_vm5, %v1140_v42, %v1138_v12  ;;  %v2909_v62 = vmul.f32 0.47942555, %v1057_v28  ;;  %v2911_v32 = vmul.f32 0.47942555, %v1064_v1  ;;  %v2913_v19 = vmul.f32 0.47942555, %v1071_v8 }
 0x206   :  { %v3089_v30 = vand.u32 2147483648, %v2678_v23  ;;  %v2919_v52 = vmul.f32 0.47942555, %v1078_v35  ;;  %v2921_v39 = vmul.f32 0.47942555, %v1085_v31  ;;  %v1181_v28 = vsub.f32 %v2761_v25, %v2890_v15 }
 0x207   :  { %v2923_v41 = vmul.f32 0.47942555, %v1092_v44  ;;  %v2925_v3 = vmul.f32 0.47942555, %v1099_v5  ;;  %v2927_v20 = vmul.f32 0.47942555, %v1106_v6  ;;  %v1182_v35 = vsub.f32 %v2780_v29, %v2903_v58 }
 0x208   :  { %v1148_v40 = vsel %vm1146_vm7, %v3089_v30, %v1145_v13  ;;  %v2929_v42 = vmul.f32 0.47942555, %v1113_v7  ;;  %v2933_v1 = vmul.f32 0.47942555, %v1120_v9  ;;  %v2935_v8 = vmul.f32 0.47942555, %v1127_v56 }
 0x209   :  { %v2937_v23 = vmul.f32 0.47942555, %v1134_v11  ;;  %v2941_v31 = vmul.f32 0.47942555, %v1141_v36  ;;  %v2943_v44 = vmul.f32 0.47942555, %v1148_v40  ;;  %v1183_v2 = vsub.f32 %v2793_v27, %v2909_v62 }
 0x20a   :  { %v1184_v48 = vsub.f32 %v2803_v54, %v2911_v32  ;;  %v1185_v25 = vsub.f32 %v2806_v57, %v2913_v19  ;;  %v1186_v5 = vsub.f32 %v2827_v43, %v2919_v52  ;;  %v1187_v6 = vsub.f32 %v2838_v4, %v2921_v39 }
 0x20b   :  { %vm1197_vm9 = vcmp.gt.f32.partialorder %v2540_v17, -0.87758255  ;;  %v1188_v29 = vsub.f32 %v2849_v45, %v2923_v41  ;;  %vm1198_vm11 = vcmp.gt.f32.partialorder %v2544_v21, -0.87758255  ;;  %vm1199_vm13 = vcmp.gt.f32.partialorder %v2542_v18, -0.87758255 }
 0x20c   :  { %vm1200_vm2 = vcmp.gt.f32.partialorder %v2546_v22, -0.87758255  ;;  %v1189_v27 = vsub.f32 %v2852_v55, %v2925_v3  ;;  %vm1201_vm4 = vcmp.gt.f32.partialorder %v2552_v33, -0.87758255  ;;  %vm1202_vm1 = vcmp.gt.f32.partialorder %v2556_v37, -0.87758255 }
 0x20d   :  { %vm1203_vm3 = vcmp.gt.f32.partialorder %v2554_v34, -0.87758255  ;;  %v1190_v54 = vsub.f32 %v2866_v53, %v2927_v20  ;;  %vm1204_vm5 = vcmp.gt.f32.partialorder %v2558_v38, -0.87758255  ;;  %vm1205_vm7 = vcmp.gt.f32.partialorder %v2563_v46, -0.87758255 }
 0x20e   :  { %vm1206_vm8 = vcmp.gt.f32.partialorder %v2567_v50, -0.87758255  ;;  %v1191_v57 = vsub.f32 %v2876_v61, %v2929_v42  ;;  %vm1207_vm12 = vcmp.gt.f32.partialorder %v2565_v47, -0.87758255  ;;  %vm1208_vm6 = vcmp.gt.f32.partialorder %v2569_v51, -0.87758255 }
 0x20f   :  { %vm1209_vm10 = vcmp.gt.f32.partialorder %v2571_v59, -0.87758255  ;;  %v1192_v43 = vsub.f32 %v2879_v14, %v2933_v1  ;;  %vm1210_vm14 = vcmp.gt.f32.partialorder %v2575_v63, -0.87758255  ;;  %vm1211_vm15 = vcmp.gt.f32.partialorder %v2573_v60, -0.87758255 }
 0x210   :  { %vm1212_vm0 = vcmp.gt.f32.partialorder %v2577_v0, -0.87758255  ;;  %v1193_v4 = vsub.f32 %v2885_v49, %v2935_v8  ;;  %v1364_v45 = vadd.f32 -0.23971277, %v2540_v17  ;;  %v1365_v55 = vadd.f32 -0.23971277, %v2544_v21 }
 0x211   :  { %v1366_v7 = vadd.f32 -0.23971277, %v2542_v18  ;;  %v1194_v9 = vsub.f32 %v2888_v16, %v2937_v23  ;;  %v1367_v10 = vadd.f32 -0.23971277, %v2546_v22  ;;  %v1368_v53 = vadd.f32 -0.23971277, %v2552_v33 }
 0x212   :  { %v1369_v56 = vadd.f32 -0.23971277, %v2556_v37  ;;  %v1195_v12 = vsub.f32 %v2897_v24, %v2941_v31  ;;  %v1370_v61 = vadd.f32 -0.23971277, %v2554_v34  ;;  %v1371_v14 = vadd.f32 -0.23971277, %v2558_v38 }
 0x213   :  { %v1372_v13 = vadd.f32 -0.23971277, %v2563_v46  ;;  %v1196_v49 = vsub.f32 %v2900_v26, %v2943_v44  ;;  %v1373_v16 = vadd.f32 -0.23971277, %v2567_v50  ;;  %v1374_v15 = vadd.f32 -0.23971277, %v2565_v47 }
 0x214   :  { %v1375_v11 = vadd.f32 -0.23971277, %v2569_v51  ;;  %v1376_v58 = vadd.f32 -0.23971277, %v2571_v59  ;;  %v1377_v36 = vadd.f32 -0.23971277, %v2575_v63  ;;  %v1229_v62 = vsel %vm1197_vm9, %v1181_v28, %v1364_v45 }
 0x215   :  { %v1378_v24 = vadd.f32 -0.23971277, %v2573_v60  ;;  %v1379_v32 = vadd.f32 -0.23971277, %v2577_v0  ;;  %v1230_v26 = vsel %vm1198_vm11, %v1182_v35, %v1365_v55  ;;  %v1231_v19 = vsel %vm1199_vm13, %v1183_v2, %v1366_v7 }
 0x216   :  { %v3090_v30 = vlaneseq  ;;  %v1232_v52 = vsel %vm1200_vm2, %v1184_v48, %v1367_v10  ;;  %v1233_v39 = vsel %vm1201_vm4, %v1185_v25, %v1368_v53  ;;  %v1234_v41 = vsel %vm1202_vm1, %v1186_v5, %v1369_v56 }
 0x217   :  { %v1235_v3 = vsel %vm1203_vm3, %v1187_v6, %v1370_v61  ;;  %v1236_v20 = vsel %vm1204_vm5, %v1188_v29, %v1371_v14  ;;  %v1237_v42 = vsel %vm1205_vm7, %v1189_v27, %v1372_v13  ;;  %v1238_v28 = vsel %vm1206_vm8, %v1190_v54, %v1373_v16 }
 0x218   :  { %v1247_v40 = vand.u32 127, %v3090_v30  ;;  %v1239_v1 = vsel %vm1207_vm12, %v1191_v57, %v1374_v15  ;;  %v1240_v8 = vsel %vm1208_vm6, %v1192_v43, %v1375_v11  ;;  %v1241_v23 = vsel %vm1209_vm10, %v1193_v4, %v1376_v58 }
 0x219   :  { %v1242_v35 = vsel %vm1210_vm14, %v1194_v9, %v1377_v36  ;;  %v1243_v31 = vsel %vm1211_vm15, %v1195_v12, %v1378_v24  ;;  %v1244_v44 = vsel %vm1212_vm0, %v1196_v49, %v1379_v32 }
 0x21a   :  { %v1248_v2 = vadd.s32 128, %v1247_v40  ;;  %v1249_v48 = vadd.s32 256, %v1247_v40  ;;  %v1250_v25 = vadd.s32 384, %v1247_v40  ;;  %v1251_v5 = vadd.s32 512, %v1247_v40 }
 0x21b   :  { %v1252_v6 = vadd.s32 640, %v1247_v40  ;;  %v1253_v29 = vadd.s32 768, %v1247_v40  ;;  %v1254_v27 = vadd.s32 896, %v1247_v40  ;;  %v1255_v54 = vadd.s32 1024, %v1247_v40 }
 0x21c   :  { %v1256_v57 = vadd.s32 1152, %v1247_v40  ;;  %v1257_v43 = vadd.s32 1280, %v1247_v40  ;;  %v1258_v4 = vadd.s32 1408, %v1247_v40  ;;  %v1259_v55 = vadd.s32 1536, %v1247_v40 }
 0x21d   :  { %v1260_v7 = vadd.s32 1664, %v1247_v40  ;;  %v1261_v9 = vadd.s32 1792, %v1247_v40  ;;  %v1262_v10 = vadd.s32 1920, %v1247_v40 }
 0x256   :  { %v1283_v45 = vpop.permute.xlu0 %1282 }
 0x257   :  { %vm1284_vm9 = vcmp.eq.s32.totalorder %v1247_v40, %v1283_v45  ;;  %vm1285_vm11 = vcmp.eq.s32.totalorder %v1248_v2, %v1283_v45  ;;  %vm1286_vm13 = vcmp.eq.s32.totalorder %v1249_v48, %v1283_v45  ;;  %vm1287_vm2 = vcmp.eq.s32.totalorder %v1250_v25, %v1283_v45 }
 0x258   :  { %vm1288_vm4 = vcmp.eq.s32.totalorder %v1251_v5, %v1283_v45  ;;  %vm1289_vm1 = vcmp.eq.s32.totalorder %v1252_v6, %v1283_v45  ;;  %vm1290_vm3 = vcmp.eq.s32.totalorder %v1253_v29, %v1283_v45  ;;  %vm1291_vm5 = vcmp.eq.s32.totalorder %v1254_v27, %v1283_v45 }
 0x259   :  { %vm1292_vm7 = vcmp.eq.s32.totalorder %v1255_v54, %v1283_v45  ;;  %vm1293_vm8 = vcmp.eq.s32.totalorder %v1256_v57, %v1283_v45  ;;  %vm1294_vm12 = vcmp.eq.s32.totalorder %v1257_v43, %v1283_v45  ;;  %vm1295_vm6 = vcmp.eq.s32.totalorder %v1258_v4, %v1283_v45 }
 0x25a   :  { %vm1296_vm10 = vcmp.eq.s32.totalorder %v1259_v55, %v1283_v45  ;;  %vm1297_vm14 = vcmp.eq.s32.totalorder %v1260_v7, %v1283_v45  ;;  %vm1298_vm15 = vcmp.eq.s32.totalorder %v1261_v9, %v1283_v45  ;;  %vm1299_vm0 = vcmp.eq.s32.totalorder %v1262_v10, %v1283_v45 }
 0x25b   :  { %v1300_v53 = vsel %vm1284_vm9, %v1229_v62, %v2540_v17  ;;  %v1301_v56 = vsel %vm1285_vm11, %v1230_v26, %v2544_v21  ;;  %v1302_v12 = vsel %vm1286_vm13, %v1231_v19, %v2542_v18  ;;  %v1303_v61 = vsel %vm1287_vm2, %v1232_v52, %v2546_v22 }
 0x25c   :  { %v1304_v14 = vsel %vm1288_vm4, %v1233_v39, %v2552_v33  ;;  %v1305_v13 = vsel %vm1289_vm1, %v1234_v41, %v2556_v37  ;;  %v1306_v49 = vsel %vm1290_vm3, %v1235_v3, %v2554_v34  ;;  %v1307_v17 = vsel %vm1291_vm5, %v1236_v20, %v2558_v38 }
 0x25d   :  { %v1308_v21 = vsel %vm1292_vm7, %v1237_v42, %v2563_v46  ;;  %v1309_v18 = vsel %vm1293_vm8, %v1238_v28, %v2567_v50  ;;  %v1310_v22 = vsel %vm1294_vm12, %v1239_v1, %v2565_v47  ;;  %v1311_v33 = vsel %vm1295_vm6, %v1240_v8, %v2569_v51 }
 0x25e   :  { %v1312_v37 = vsel %vm1296_vm10, %v1241_v23, %v2571_v59  ;;  %v1313_v34 = vsel %vm1297_vm14, %v1242_v35, %v2575_v63  ;;  %v1314_v38 = vsel %vm1298_vm15, %v1243_v31, %v2573_v60  ;;  %v1315_v46 = vsel %vm1299_vm0, %v1244_v44, %v2577_v0 }
 0x25f   :  { %v1316_v16 = vmul.f32 64.0, %v1300_v53  ;;  %v1317_v50 = vmul.f32 64.0, %v1301_v56  ;;  %v1318_v15 = vmul.f32 64.0, %v1302_v12  ;;  %v1319_v11 = vmul.f32 64.0, %v1303_v61 }
 0x260   :  { %v1320_v47 = vmul.f32 64.0, %v1304_v14  ;;  %v1321_v58 = vmul.f32 64.0, %v1305_v13  ;;  %v1322_v36 = vmul.f32 64.0, %v1306_v49  ;;  %v1323_v51 = vmul.f32 64.0, %v1307_v17 }
 0x261   :  { %v1324_v24 = vmul.f32 64.0, %v1308_v21  ;;  %v1325_v62 = vmul.f32 64.0, %v1309_v18  ;;  %v1326_v59 = vmul.f32 64.0, %v1310_v22  ;;  %v1327_v32 = vmul.f32 64.0, %v1311_v33  ;;  %1332 = vst [vmem:[#allocation4] sm:$0xff] %v1316_v16  ;;  %1333 = vst [vmem:[#allocation4 + $0x8] sm:$0xff] %v1317_v50 }
 0x262   :  { %1334 = vst [vmem:[#allocation4 + $0x10] sm:$0xff] %v1318_v15  ;;  %1335 = vst [vmem:[#allocation4 + $0x18] sm:$0xff] %v1319_v11  ;;  %v1328_v60 = vmul.f32 64.0, %v1312_v37  ;;  %v1329_v63 = vmul.f32 64.0, %v1313_v34  ;;  %v1330_v26 = vmul.f32 64.0, %v1314_v38  ;;  %v1331_v0 = vmul.f32 64.0, %v1315_v46 }
 0x263   :  { %1336 = vst [vmem:[#allocation4 + $0x20] sm:$0xff] %v1320_v47  ;;  %1337 = vst [vmem:[#allocation4 + $0x28] sm:$0xff] %v1321_v58 }
 0x264   :  { %1338 = vst [vmem:[#allocation4 + $0x30] sm:$0xff] %v1322_v36  ;;  %1339 = vst [vmem:[#allocation4 + $0x38] sm:$0xff] %v1323_v51 }
 0x265   :  { %1340 = vst [vmem:[#allocation4 + $0x40] sm:$0xff] %v1324_v24  ;;  %1341 = vst [vmem:[#allocation4 + $0x48] sm:$0xff] %v1325_v62 }
 0x266   :  { %1342 = vst [vmem:[#allocation4 + $0x50] sm:$0xff] %v1326_v59  ;;  %1343 = vst [vmem:[#allocation4 + $0x58] sm:$0xff] %v1327_v32 }
 0x267   :  { %1344 = vst [vmem:[#allocation4 + $0x60] sm:$0xff] %v1328_v60  ;;  %1345 = vst [vmem:[#allocation4 + $0x68] sm:$0xff] %v1329_v63 }
 0x268   :  { %1346 = vst [vmem:[#allocation4 + $0x70] sm:$0xff] %v1330_v26  ;;  %1347 = vst [vmem:[#allocation4 + $0x78] sm:$0xff] %v1331_v0 }
 0x269 PF:  { %s1710_s0 = smov [#allocation4]  }
 0x26a   :  { %s1354_s4 = sshll.u32 %s1710_s0, 4  ;;  %s1355_s4 = int_to_ptr.vmem [resolvable:$true] %s1354_s4 }
 0x26b   :  { %s1687_s22 = scalar_lea.vmem %s1355_s4, 2048  ;;  %p1692_p3 = scmp.lt.s32.totalorder %s1355_s4, %s1355_s4 }
 0x26c   :  { %p1688_p2 = scmp.ne.s32.totalorder %s1355_s4, %s1687_s22  ;;  %p1693_p4 = scmp.lt.s32.totalorder %s1687_s22, %s1687_s22 }
 0x26e   :  { %p1694_p5 = por %p1693_p4, %p1692_p3 }
 0x270   :  { %p1695_p6 = pnand %p1694_p5, %p1688_p2 }
 0x272   :  { %1698 = shalt.err (!%p1695_p6)
}
 0x273   :  { %1357 = dma.vmem_to_hbm [thread:$0]  %s1355_s4, 2048, %s3078_s5, [#allocation5]  }
 0x274   :  { %1707 = dma.done.wait [#allocation5], 2048  }
 0x275   :  { %1708 = vsyncadd [#allocation5], 4294965248 }
 0x276   :  { %1361 = vsyncpa [#allocation5], 1 }

</bundles_post_ra>
